<compile_context>
chip_gen: v6e
topology: v6e:2x2x1
jax: 0.10.0
libtpu: 0.0.40
codegen_flags: <defaults>
</compile_context>

<pallas_src>
import math

import jax
import jax.numpy as jnp
from jax import lax
from jax.experimental import pallas as pl
from jax.experimental.pallas import tpu as pltpu


# ------------------------------------------------------------------ in-kernel building blocks
def _gcn_relu(a, x, w, b_row):
    # relu( D^-1/2 (A + I) D^-1/2 X W + b ) without materializing (A + I) or the normalized
    # N x N adjacency: the scaling is O(N*C) on the activation instead of O(N^2).
    deg = jnp.sum(a, axis=1, keepdims=True) + 1.0                # (n, 1), >= 1 (self-loop)
    dinv = lax.rsqrt(deg)
    xw = jnp.dot(x, w, preferred_element_type=jnp.float32)       # (n, C)
    t = dinv * xw
    h = dinv * (jnp.dot(a, t, preferred_element_type=jnp.float32) + t) + b_row
    return jnp.maximum(h, 0.0)                                   # F.relu


def _sag_score_row(a, h, w_root_row, w_rel_row, b_rel):
    # SAGPooling score: GraphConv(aggr='add') -> 1 followed by tanh, computed in lane-dense
    # (1, n) row space:  s_i = tanh( w_rel . sum_{j~i} h_j + b_rel + w_root . h_i )
    cdn = (((1,), (1,)), ((), ()))                               # contract the feature axis
    rel_row = lax.dot_general(w_rel_row, h, cdn,
                              preferred_element_type=jnp.float32)   # (1, n)
    root_row = lax.dot_general(w_root_row, h, cdn,
                               preferred_element_type=jnp.float32)  # (1, n)
    # A is symmetric, so (A @ rel)^T == rel_row @ A : one (1,n)@(n,n) row matvec on the MXU.
    agg_row = jnp.dot(rel_row, a, preferred_element_type=jnp.float32)
    return jnp.tanh(agg_row + root_row + b_rel)                  # (1, n)


def _topk_selection_matrix(s_row, k):
    # One-hot selection matrix P (k, n): row i picks the i-th largest score (ties -> lowest
    # index, i.e. a stable descending top-k).  Iterative masked argmax; k is a static int.
    n = s_row.shape[1]
    col1 = lax.broadcasted_iota(jnp.int32, (1, n), 1).astype(jnp.float32)
    colk = lax.broadcasted_iota(jnp.int32, (k, n), 1).astype(jnp.float32)
    rowk = lax.broadcasted_iota(jnp.int32, (k, n), 0)
    p = jnp.zeros((k, n), jnp.float32)
    remaining = s_row
    for i in range(k):
        m = jnp.max(remaining, axis=1, keepdims=True)                        # (1, 1)
        idx = jnp.min(jnp.where(remaining == m, col1, float(n)),
                      axis=1, keepdims=True)                                 # (1, 1)
        p = p + jnp.where(jnp.logical_and(rowk == i, colk == idx), 1.0, 0.0)
        remaining = jnp.where(col1 == idx, -2.0, remaining)    # tanh scores live in [-1, 1]
    return p


def _make_convgnn_kernel(num_layers, pool_ks):
    def kernel(*refs):
        a_ref, x_ref = refs[0], refs[1]
        layer_refs = refs[2:2 + 5 * num_layers]
        w_lin_ref = refs[2 + 5 * num_layers]
        b_lin_ref = refs[3 + 5 * num_layers]
        o_ref = refs[4 + 5 * num_layers]

        a = a_ref[...]
        x = x_ref[...]
        for li in range(num_layers):
            w_ref, b_ref, wroot_ref, wrel_ref, brel_ref = layer_refs[5 * li:5 * li + 5]
            h = _gcn_relu(a, x, w_ref[...], b_ref[...])                       # GCNConv + relu
            s_row = _sag_score_row(a, h, wroot_ref[...], wrel_ref[...],
                                   brel_ref[0])                               # (1, n)
            p = _topk_selection_matrix(s_row, pool_ks[li])                    # (k, n)
            s_sel = jnp.sum(p * s_row, axis=1, keepdims=True)                 # (k, 1)
            x = jnp.dot(p, h, preferred_element_type=jnp.float32) * s_sel     # x[perm]*score
            pa = jnp.dot(p, a, preferred_element_type=jnp.float32)
            a = lax.dot_general(pa, p, (((1,), (1,)), ((), ())),
                                preferred_element_type=jnp.float32)           # P A P^T

        # Linear + log_softmax(dim=1)
        z = jnp.dot(x, w_lin_ref[...], preferred_element_type=jnp.float32) + b_lin_ref[...]
        m = jnp.max(z, axis=1, keepdims=True)
        lse = jnp.log(jnp.sum(jnp.exp(z - m), axis=1, keepdims=True))
        o_ref[...] = z - m - lse

    return kernel


# ------------------------------------------------------------------ wrapper (single pallas_call)
def conv_gnn_forward(params, x, a, *, ratio=0.5):
    n = x.shape[0]
    num_layers = len(params["convs"])
    out_channels = params["lin"][0].shape[1]

    pool_ks = []
    cur = n
    for _ in range(num_layers):
        cur = int(math.ceil(ratio * cur))
        pool_ks.append(cur)
    assert pool_ks[-1] >= 1

    vmem = pl.BlockSpec(memory_space=pltpu.MemorySpace.VMEM)
    smem = pl.BlockSpec(memory_space=pltpu.MemorySpace.SMEM)

    args = [a, x]
    specs = [vmem, vmem]
    for (w, b), (w_root, w_rel, b_rel) in zip(params["convs"], params["pools"]):
        args += [w, b.reshape(1, -1), w_root.reshape(1, -1), w_rel.reshape(1, -1), b_rel]
        specs += [vmem, vmem, vmem, vmem, smem]
    w_lin, b_lin = params["lin"]
    args += [w_lin, b_lin.reshape(1, -1)]
    specs += [vmem, vmem]

    kernel = _make_convgnn_kernel(num_layers, pool_ks)
    return pl.pallas_call(
        kernel,
        out_shape=jax.ShapeDtypeStruct((pool_ks[-1], out_channels), jnp.float32),
        in_specs=specs,
        out_specs=vmem,
    )(*args)


# ------------------------------------------------------------------ parameter init
def _glorot(key, shape):
    fan_in, fan_out = shape[0], shape[1]
    scale = math.sqrt(2.0 / (fan_in + fan_out))
    return (jax.random.normal(key, shape, dtype=jnp.float32) * scale).astype(jnp.float32)


def init_params(key, in_channels, hidden_channels, out_channels, num_layers):
    params = {"convs": [], "pools": []}
    for i in range(num_layers):
        c_in = in_channels if i == 0 else hidden_channels
        key, k1, k2, k3 = jax.random.split(key, 4)
        params["convs"].append((_glorot(k1, (c_in, hidden_channels)),
                                jnp.zeros((hidden_channels,), jnp.float32)))
        params["pools"].append((_glorot(k2, (hidden_channels, 1)),   # W_root
                                _glorot(k3, (hidden_channels, 1)),   # W_rel
                                jnp.zeros((1,), jnp.float32)))       # b_rel
    key, k = jax.random.split(key)
    params["lin"] = (_glorot(k, (hidden_channels, out_channels)),
                     jnp.zeros((out_channels,), jnp.float32))
    return params


# ------------------------------------------------------------------ pure-JAX reference
def reference_forward(params, x, a, ratio=0.5):
    for (w, b), (w_root, w_rel, b_rel) in zip(params["convs"], params["pools"]):
        deg = jnp.sum(a, axis=1, keepdims=True) + 1.0
        dinv = lax.rsqrt(deg)
        xw = x @ w
        h = jax.nn.relu(dinv * (a @ (dinv * xw) + dinv * xw) + b[None, :])
        s = jnp.tanh(a @ (h @ w_rel) + h @ w_root + b_rel)[:, 0]
        k = int(math.ceil(ratio * h.shape[0]))
        top_s, perm = jax.lax.top_k(s, k)
        x = h[perm] * top_s[:, None]
        a = a[jnp.ix_(perm, perm)]
    w_lin, b_lin = params["lin"]
    z = x @ w_lin + b_lin[None, :]
    return jax.nn.log_softmax(z, axis=1)


# ------------------------------------------------------------------ main
if __name__ == "__main__":
    IN_CHANNELS, HIDDEN, OUT, NUM_LAYERS = 8, 32, 32, 4
    N_NODES = 16   # pooling: 16 -> 8 -> 4 -> 2 -> 1

    key = jax.random.PRNGKey(0)
    key, k_x, k_a, k_p = jax.random.split(key, 4)

    x = jax.random.normal(k_x, (N_NODES, IN_CHANNELS), dtype=jnp.float32)
    upper = jnp.triu(jax.random.bernoulli(k_a, 0.35, (N_NODES, N_NODES)).astype(jnp.float32), k=1)
    adj = upper + upper.T          # symmetric, zero diagonal (undirected graph)

    params = init_params(k_p, IN_CHANNELS, HIDDEN, OUT, NUM_LAYERS)

    fwd = jax.jit(lambda p, xx, aa: conv_gnn_forward(p, xx, aa))
    out = jax.block_until_ready(fwd(params, x, adj))
    ref = reference_forward(params, x, adj)

    assert out.shape == (1, OUT), out.shape
    assert bool(jnp.all(jnp.isfinite(out)))
    # rows of log_softmax must sum (in prob space) to 1
    assert bool(jnp.allclose(jnp.sum(jnp.exp(out), axis=1), 1.0, atol=1e-4))
    # match the plain-JAX reference of the same forward
    assert bool(jnp.allclose(out, ref, atol=5e-3, rtol=5e-3)), (out, ref)
    print("KERNEL_OK")
</pallas_src>

<mosaic_0001>
module attributes {stable_mosaic.version = 11 : i64} {
  func.func @kernel(%arg0: memref<16x16xf32, #tpu.memory_space<vmem>>, %arg1: memref<16x8xf32, #tpu.memory_space<vmem>>, %arg2: memref<8x32xf32, #tpu.memory_space<vmem>>, %arg3: memref<1x32xf32, #tpu.memory_space<vmem>>, %arg4: memref<1x32xf32, #tpu.memory_space<vmem>>, %arg5: memref<1x32xf32, #tpu.memory_space<vmem>>, %arg6: memref<1xf32, #tpu.memory_space<smem>>, %arg7: memref<32x32xf32, #tpu.memory_space<vmem>>, %arg8: memref<1x32xf32, #tpu.memory_space<vmem>>, %arg9: memref<1x32xf32, #tpu.memory_space<vmem>>, %arg10: memref<1x32xf32, #tpu.memory_space<vmem>>, %arg11: memref<1xf32, #tpu.memory_space<smem>>, %arg12: memref<32x32xf32, #tpu.memory_space<vmem>>, %arg13: memref<1x32xf32, #tpu.memory_space<vmem>>, %arg14: memref<1x32xf32, #tpu.memory_space<vmem>>, %arg15: memref<1x32xf32, #tpu.memory_space<vmem>>, %arg16: memref<1xf32, #tpu.memory_space<smem>>, %arg17: memref<32x32xf32, #tpu.memory_space<vmem>>, %arg18: memref<1x32xf32, #tpu.memory_space<vmem>>, %arg19: memref<1x32xf32, #tpu.memory_space<vmem>>, %arg20: memref<1x32xf32, #tpu.memory_space<vmem>>, %arg21: memref<1xf32, #tpu.memory_space<smem>>, %arg22: memref<32x32xf32, #tpu.memory_space<vmem>>, %arg23: memref<1x32xf32, #tpu.memory_space<vmem>>, %arg24: memref<1x32xf32, #tpu.memory_space<vmem>>) attributes {dimension_semantics = [], scalar_prefetch = 0 : i64, scratch_operands = 0 : i64, tpu.core_type = #tpu.core_type<tc>} {
    %c0 = arith.constant 0 : index
    %c0_0 = arith.constant 0 : index
    %0 = vector.load %arg0[%c0, %c0_0] : memref<16x16xf32, #tpu.memory_space<vmem>>, vector<16x16xf32>
    %c0_1 = arith.constant 0 : index
    %c0_2 = arith.constant 0 : index
    %1 = vector.load %arg1[%c0_1, %c0_2] : memref<16x8xf32, #tpu.memory_space<vmem>>, vector<16x8xf32>
    %c0_3 = arith.constant 0 : index
    %c0_4 = arith.constant 0 : index
    %2 = vector.load %arg2[%c0_3, %c0_4] : memref<8x32xf32, #tpu.memory_space<vmem>>, vector<8x32xf32>
    %c0_5 = arith.constant 0 : index
    %c0_6 = arith.constant 0 : index
    %3 = vector.load %arg3[%c0_5, %c0_6] : memref<1x32xf32, #tpu.memory_space<vmem>>, vector<1x32xf32>
    %cst = arith.constant dense<0.000000e+00> : vector<16xf32>
    %4 = vector.multi_reduction <add>, %0, %cst [1] : vector<16x16xf32> to vector<16xf32>
    %5 = vector.shape_cast %4 : vector<16xf32> to vector<16x1xf32>
    %cst_7 = arith.constant 1.000000e+00 : f32
    %6 = vector.broadcast %cst_7 : f32 to vector<16x1xf32>
    %7 = arith.addf %5, %6 : vector<16x1xf32>
    %8 = math.rsqrt %7 : vector<16x1xf32>
    %cst_8 = arith.constant dense<0.000000e+00> : vector<16x32xf32>
    %9 = tpu.matmul %1, %2, %cst_8 {dimension_numbers = #tpu.dot_dimension_numbers<[1], [0], [0], [1], [0, 0, 1, 1], [], []>} : vector<16x8xf32>, vector<8x32xf32>, vector<16x32xf32> -> vector<16x32xf32>
    %10 = vector.broadcast %8 : vector<16x1xf32> to vector<16x32xf32>
    %11 = arith.mulf %10, %9 : vector<16x32xf32>
    %cst_9 = arith.constant dense<0.000000e+00> : vector<16x32xf32>
    %12 = tpu.matmul %0, %11, %cst_9 {dimension_numbers = #tpu.dot_dimension_numbers<[1], [0], [0], [1], [0, 0, 1, 1], [], []>} : vector<16x16xf32>, vector<16x32xf32>, vector<16x32xf32> -> vector<16x32xf32>
    %13 = arith.addf %12, %11 : vector<16x32xf32>
    %14 = vector.broadcast %8 : vector<16x1xf32> to vector<16x32xf32>
    %15 = arith.mulf %14, %13 : vector<16x32xf32>
    %16 = vector.broadcast %3 : vector<1x32xf32> to vector<16x32xf32>
    %17 = arith.addf %15, %16 : vector<16x32xf32>
    %cst_10 = arith.constant 0.000000e+00 : f32
    %18 = vector.broadcast %cst_10 : f32 to vector<16x32xf32>
    %19 = arith.maximumf %17, %18 : vector<16x32xf32>
    %c0_11 = arith.constant 0 : index
    %c0_12 = arith.constant 0 : index
    %20 = vector.load %arg4[%c0_11, %c0_12] : memref<1x32xf32, #tpu.memory_space<vmem>>, vector<1x32xf32>
    %c0_13 = arith.constant 0 : index
    %c0_14 = arith.constant 0 : index
    %21 = vector.load %arg5[%c0_13, %c0_14] : memref<1x32xf32, #tpu.memory_space<vmem>>, vector<1x32xf32>
    %c0_15 = arith.constant 0 : index
    %22 = memref.load %arg6[%c0_15] : memref<1xf32, #tpu.memory_space<smem>>
    %cst_16 = arith.constant dense<0.000000e+00> : vector<1x16xf32>
    %23 = tpu.matmul %21, %19, %cst_16 {dimension_numbers = #tpu.dot_dimension_numbers<[1], [1], [0], [0], [0, 0, 1, 0], [], []>} : vector<1x32xf32>, vector<16x32xf32>, vector<1x16xf32> -> vector<1x16xf32>
    %cst_17 = arith.constant dense<0.000000e+00> : vector<1x16xf32>
    %24 = tpu.matmul %20, %19, %cst_17 {dimension_numbers = #tpu.dot_dimension_numbers<[1], [1], [0], [0], [0, 0, 1, 0], [], []>} : vector<1x32xf32>, vector<16x32xf32>, vector<1x16xf32> -> vector<1x16xf32>
    %cst_18 = arith.constant dense<0.000000e+00> : vector<1x16xf32>
    %25 = tpu.matmul %23, %0, %cst_18 {dimension_numbers = #tpu.dot_dimension_numbers<[1], [0], [0], [1], [0, 0, 1, 1], [], []>} : vector<1x16xf32>, vector<16x16xf32>, vector<1x16xf32> -> vector<1x16xf32>
    %26 = arith.addf %25, %24 : vector<1x16xf32>
    %27 = vector.broadcast %22 : f32 to vector<1x16xf32>
    %28 = arith.addf %26, %27 : vector<1x16xf32>
    %29 = math.tanh %28 : vector<1x16xf32>
    %30 = tpu.iota {dimensions = array<i32: 1>} : vector<1x16xi32>
    %31 = arith.sitofp %30 : vector<1x16xi32> to vector<1x16xf32>
    %32 = tpu.iota {dimensions = array<i32: 1>} : vector<8x16xi32>
    %33 = arith.sitofp %32 : vector<8x16xi32> to vector<8x16xf32>
    %34 = tpu.iota {dimensions = array<i32: 0>} : vector<8x16xi32>
    %cst_19 = arith.constant 0.000000e+00 : f32
    %35 = vector.broadcast %cst_19 : f32 to vector<8x16xf32>
    %cst_20 = arith.constant dense<0xFF800000> : vector<1xf32>
    %36 = vector.multi_reduction <maximumf>, %29, %cst_20 [1] : vector<1x16xf32> to vector<1xf32>
    %37 = vector.shape_cast %36 : vector<1xf32> to vector<1x1xf32>
    %38 = vector.broadcast %37 : vector<1x1xf32> to vector<1x16xf32>
    %39 = arith.cmpf oeq, %29, %38 : vector<1x16xf32>
    %cst_21 = arith.constant 1.600000e+01 : f32
    %40 = vector.broadcast %cst_21 : f32 to vector<1x16xf32>
    %41 = arith.select %39, %31, %40 : vector<1x16xi1>, vector<1x16xf32>
    %cst_22 = arith.constant dense<0x7F800000> : vector<1xf32>
    %42 = vector.multi_reduction <minimumf>, %41, %cst_22 [1] : vector<1x16xf32> to vector<1xf32>
    %43 = vector.shape_cast %42 : vector<1xf32> to vector<1x1xf32>
    %c0_i32 = arith.constant 0 : i32
    %44 = vector.broadcast %c0_i32 : i32 to vector<8x16xi32>
    %45 = arith.cmpi eq, %34, %44 : vector<8x16xi32>
    %46 = vector.broadcast %43 : vector<1x1xf32> to vector<8x16xf32>
    %47 = arith.cmpf oeq, %33, %46 : vector<8x16xf32>
    %48 = arith.andi %45, %47 : vector<8x16xi1>
    %cst_23 = arith.constant 1.000000e+00 : f32
    %cst_24 = arith.constant 0.000000e+00 : f32
    %49 = vector.broadcast %cst_23 : f32 to vector<8x16xf32>
    %50 = vector.broadcast %cst_24 : f32 to vector<8x16xf32>
    %51 = arith.select %48, %49, %50 : vector<8x16xi1>, vector<8x16xf32>
    %52 = arith.addf %35, %51 : vector<8x16xf32>
    %53 = vector.broadcast %43 : vector<1x1xf32> to vector<1x16xf32>
    %54 = arith.cmpf oeq, %31, %53 : vector<1x16xf32>
    %cst_25 = arith.constant -2.000000e+00 : f32
    %55 = vector.broadcast %cst_25 : f32 to vector<1x16xf32>
    %56 = arith.select %54, %55, %29 : vector<1x16xi1>, vector<1x16xf32>
    %cst_26 = arith.constant dense<0xFF800000> : vector<1xf32>
    %57 = vector.multi_reduction <maximumf>, %56, %cst_26 [1] : vector<1x16xf32> to vector<1xf32>
    %58 = vector.shape_cast %57 : vector<1xf32> to vector<1x1xf32>
    %59 = vector.broadcast %58 : vector<1x1xf32> to vector<1x16xf32>
    %60 = arith.cmpf oeq, %56, %59 : vector<1x16xf32>
    %cst_27 = arith.constant 1.600000e+01 : f32
    %61 = vector.broadcast %cst_27 : f32 to vector<1x16xf32>
    %62 = arith.select %60, %31, %61 : vector<1x16xi1>, vector<1x16xf32>
    %cst_28 = arith.constant dense<0x7F800000> : vector<1xf32>
    %63 = vector.multi_reduction <minimumf>, %62, %cst_28 [1] : vector<1x16xf32> to vector<1xf32>
    %64 = vector.shape_cast %63 : vector<1xf32> to vector<1x1xf32>
    %c1_i32 = arith.constant 1 : i32
    %65 = vector.broadcast %c1_i32 : i32 to vector<8x16xi32>
    %66 = arith.cmpi eq, %34, %65 : vector<8x16xi32>
    %67 = vector.broadcast %64 : vector<1x1xf32> to vector<8x16xf32>
    %68 = arith.cmpf oeq, %33, %67 : vector<8x16xf32>
    %69 = arith.andi %66, %68 : vector<8x16xi1>
    %cst_29 = arith.constant 1.000000e+00 : f32
    %cst_30 = arith.constant 0.000000e+00 : f32
    %70 = vector.broadcast %cst_29 : f32 to vector<8x16xf32>
    %71 = vector.broadcast %cst_30 : f32 to vector<8x16xf32>
    %72 = arith.select %69, %70, %71 : vector<8x16xi1>, vector<8x16xf32>
    %73 = arith.addf %52, %72 : vector<8x16xf32>
    %74 = vector.broadcast %64 : vector<1x1xf32> to vector<1x16xf32>
    %75 = arith.cmpf oeq, %31, %74 : vector<1x16xf32>
    %cst_31 = arith.constant -2.000000e+00 : f32
    %76 = vector.broadcast %cst_31 : f32 to vector<1x16xf32>
    %77 = arith.select %75, %76, %56 : vector<1x16xi1>, vector<1x16xf32>
    %cst_32 = arith.constant dense<0xFF800000> : vector<1xf32>
    %78 = vector.multi_reduction <maximumf>, %77, %cst_32 [1] : vector<1x16xf32> to vector<1xf32>
    %79 = vector.shape_cast %78 : vector<1xf32> to vector<1x1xf32>
    %80 = vector.broadcast %79 : vector<1x1xf32> to vector<1x16xf32>
    %81 = arith.cmpf oeq, %77, %80 : vector<1x16xf32>
    %cst_33 = arith.constant 1.600000e+01 : f32
    %82 = vector.broadcast %cst_33 : f32 to vector<1x16xf32>
    %83 = arith.select %81, %31, %82 : vector<1x16xi1>, vector<1x16xf32>
    %cst_34 = arith.constant dense<0x7F800000> : vector<1xf32>
    %84 = vector.multi_reduction <minimumf>, %83, %cst_34 [1] : vector<1x16xf32> to vector<1xf32>
    %85 = vector.shape_cast %84 : vector<1xf32> to vector<1x1xf32>
    %c2_i32 = arith.constant 2 : i32
    %86 = vector.broadcast %c2_i32 : i32 to vector<8x16xi32>
    %87 = arith.cmpi eq, %34, %86 : vector<8x16xi32>
    %88 = vector.broadcast %85 : vector<1x1xf32> to vector<8x16xf32>
    %89 = arith.cmpf oeq, %33, %88 : vector<8x16xf32>
    %90 = arith.andi %87, %89 : vector<8x16xi1>
    %cst_35 = arith.constant 1.000000e+00 : f32
    %cst_36 = arith.constant 0.000000e+00 : f32
    %91 = vector.broadcast %cst_35 : f32 to vector<8x16xf32>
    %92 = vector.broadcast %cst_36 : f32 to vector<8x16xf32>
    %93 = arith.select %90, %91, %92 : vector<8x16xi1>, vector<8x16xf32>
    %94 = arith.addf %73, %93 : vector<8x16xf32>
    %95 = vector.broadcast %85 : vector<1x1xf32> to vector<1x16xf32>
    %96 = arith.cmpf oeq, %31, %95 : vector<1x16xf32>
    %cst_37 = arith.constant -2.000000e+00 : f32
    %97 = vector.broadcast %cst_37 : f32 to vector<1x16xf32>
    %98 = arith.select %96, %97, %77 : vector<1x16xi1>, vector<1x16xf32>
    %cst_38 = arith.constant dense<0xFF800000> : vector<1xf32>
    %99 = vector.multi_reduction <maximumf>, %98, %cst_38 [1] : vector<1x16xf32> to vector<1xf32>
    %100 = vector.shape_cast %99 : vector<1xf32> to vector<1x1xf32>
    %101 = vector.broadcast %100 : vector<1x1xf32> to vector<1x16xf32>
    %102 = arith.cmpf oeq, %98, %101 : vector<1x16xf32>
    %cst_39 = arith.constant 1.600000e+01 : f32
    %103 = vector.broadcast %cst_39 : f32 to vector<1x16xf32>
    %104 = arith.select %102, %31, %103 : vector<1x16xi1>, vector<1x16xf32>
    %cst_40 = arith.constant dense<0x7F800000> : vector<1xf32>
    %105 = vector.multi_reduction <minimumf>, %104, %cst_40 [1] : vector<1x16xf32> to vector<1xf32>
    %106 = vector.shape_cast %105 : vector<1xf32> to vector<1x1xf32>
    %c3_i32 = arith.constant 3 : i32
    %107 = vector.broadcast %c3_i32 : i32 to vector<8x16xi32>
    %108 = arith.cmpi eq, %34, %107 : vector<8x16xi32>
    %109 = vector.broadcast %106 : vector<1x1xf32> to vector<8x16xf32>
    %110 = arith.cmpf oeq, %33, %109 : vector<8x16xf32>
    %111 = arith.andi %108, %110 : vector<8x16xi1>
    %cst_41 = arith.constant 1.000000e+00 : f32
    %cst_42 = arith.constant 0.000000e+00 : f32
    %112 = vector.broadcast %cst_41 : f32 to vector<8x16xf32>
    %113 = vector.broadcast %cst_42 : f32 to vector<8x16xf32>
    %114 = arith.select %111, %112, %113 : vector<8x16xi1>, vector<8x16xf32>
    %115 = arith.addf %94, %114 : vector<8x16xf32>
    %116 = vector.broadcast %106 : vector<1x1xf32> to vector<1x16xf32>
    %117 = arith.cmpf oeq, %31, %116 : vector<1x16xf32>
    %cst_43 = arith.constant -2.000000e+00 : f32
    %118 = vector.broadcast %cst_43 : f32 to vector<1x16xf32>
    %119 = arith.select %117, %118, %98 : vector<1x16xi1>, vector<1x16xf32>
    %cst_44 = arith.constant dense<0xFF800000> : vector<1xf32>
    %120 = vector.multi_reduction <maximumf>, %119, %cst_44 [1] : vector<1x16xf32> to vector<1xf32>
    %121 = vector.shape_cast %120 : vector<1xf32> to vector<1x1xf32>
    %122 = vector.broadcast %121 : vector<1x1xf32> to vector<1x16xf32>
    %123 = arith.cmpf oeq, %119, %122 : vector<1x16xf32>
    %cst_45 = arith.constant 1.600000e+01 : f32
    %124 = vector.broadcast %cst_45 : f32 to vector<1x16xf32>
    %125 = arith.select %123, %31, %124 : vector<1x16xi1>, vector<1x16xf32>
    %cst_46 = arith.constant dense<0x7F800000> : vector<1xf32>
    %126 = vector.multi_reduction <minimumf>, %125, %cst_46 [1] : vector<1x16xf32> to vector<1xf32>
    %127 = vector.shape_cast %126 : vector<1xf32> to vector<1x1xf32>
    %c4_i32 = arith.constant 4 : i32
    %128 = vector.broadcast %c4_i32 : i32 to vector<8x16xi32>
    %129 = arith.cmpi eq, %34, %128 : vector<8x16xi32>
    %130 = vector.broadcast %127 : vector<1x1xf32> to vector<8x16xf32>
    %131 = arith.cmpf oeq, %33, %130 : vector<8x16xf32>
    %132 = arith.andi %129, %131 : vector<8x16xi1>
    %cst_47 = arith.constant 1.000000e+00 : f32
    %cst_48 = arith.constant 0.000000e+00 : f32
    %133 = vector.broadcast %cst_47 : f32 to vector<8x16xf32>
    %134 = vector.broadcast %cst_48 : f32 to vector<8x16xf32>
    %135 = arith.select %132, %133, %134 : vector<8x16xi1>, vector<8x16xf32>
    %136 = arith.addf %115, %135 : vector<8x16xf32>
    %137 = vector.broadcast %127 : vector<1x1xf32> to vector<1x16xf32>
    %138 = arith.cmpf oeq, %31, %137 : vector<1x16xf32>
    %cst_49 = arith.constant -2.000000e+00 : f32
    %139 = vector.broadcast %cst_49 : f32 to vector<1x16xf32>
    %140 = arith.select %138, %139, %119 : vector<1x16xi1>, vector<1x16xf32>
    %cst_50 = arith.constant dense<0xFF800000> : vector<1xf32>
    %141 = vector.multi_reduction <maximumf>, %140, %cst_50 [1] : vector<1x16xf32> to vector<1xf32>
    %142 = vector.shape_cast %141 : vector<1xf32> to vector<1x1xf32>
    %143 = vector.broadcast %142 : vector<1x1xf32> to vector<1x16xf32>
    %144 = arith.cmpf oeq, %140, %143 : vector<1x16xf32>
    %cst_51 = arith.constant 1.600000e+01 : f32
    %145 = vector.broadcast %cst_51 : f32 to vector<1x16xf32>
    %146 = arith.select %144, %31, %145 : vector<1x16xi1>, vector<1x16xf32>
    %cst_52 = arith.constant dense<0x7F800000> : vector<1xf32>
    %147 = vector.multi_reduction <minimumf>, %146, %cst_52 [1] : vector<1x16xf32> to vector<1xf32>
    %148 = vector.shape_cast %147 : vector<1xf32> to vector<1x1xf32>
    %c5_i32 = arith.constant 5 : i32
    %149 = vector.broadcast %c5_i32 : i32 to vector<8x16xi32>
    %150 = arith.cmpi eq, %34, %149 : vector<8x16xi32>
    %151 = vector.broadcast %148 : vector<1x1xf32> to vector<8x16xf32>
    %152 = arith.cmpf oeq, %33, %151 : vector<8x16xf32>
    %153 = arith.andi %150, %152 : vector<8x16xi1>
    %cst_53 = arith.constant 1.000000e+00 : f32
    %cst_54 = arith.constant 0.000000e+00 : f32
    %154 = vector.broadcast %cst_53 : f32 to vector<8x16xf32>
    %155 = vector.broadcast %cst_54 : f32 to vector<8x16xf32>
    %156 = arith.select %153, %154, %155 : vector<8x16xi1>, vector<8x16xf32>
    %157 = arith.addf %136, %156 : vector<8x16xf32>
    %158 = vector.broadcast %148 : vector<1x1xf32> to vector<1x16xf32>
    %159 = arith.cmpf oeq, %31, %158 : vector<1x16xf32>
    %cst_55 = arith.constant -2.000000e+00 : f32
    %160 = vector.broadcast %cst_55 : f32 to vector<1x16xf32>
    %161 = arith.select %159, %160, %140 : vector<1x16xi1>, vector<1x16xf32>
    %cst_56 = arith.constant dense<0xFF800000> : vector<1xf32>
    %162 = vector.multi_reduction <maximumf>, %161, %cst_56 [1] : vector<1x16xf32> to vector<1xf32>
    %163 = vector.shape_cast %162 : vector<1xf32> to vector<1x1xf32>
    %164 = vector.broadcast %163 : vector<1x1xf32> to vector<1x16xf32>
    %165 = arith.cmpf oeq, %161, %164 : vector<1x16xf32>
    %cst_57 = arith.constant 1.600000e+01 : f32
    %166 = vector.broadcast %cst_57 : f32 to vector<1x16xf32>
    %167 = arith.select %165, %31, %166 : vector<1x16xi1>, vector<1x16xf32>
    %cst_58 = arith.constant dense<0x7F800000> : vector<1xf32>
    %168 = vector.multi_reduction <minimumf>, %167, %cst_58 [1] : vector<1x16xf32> to vector<1xf32>
    %169 = vector.shape_cast %168 : vector<1xf32> to vector<1x1xf32>
    %c6_i32 = arith.constant 6 : i32
    %170 = vector.broadcast %c6_i32 : i32 to vector<8x16xi32>
    %171 = arith.cmpi eq, %34, %170 : vector<8x16xi32>
    %172 = vector.broadcast %169 : vector<1x1xf32> to vector<8x16xf32>
    %173 = arith.cmpf oeq, %33, %172 : vector<8x16xf32>
    %174 = arith.andi %171, %173 : vector<8x16xi1>
    %cst_59 = arith.constant 1.000000e+00 : f32
    %cst_60 = arith.constant 0.000000e+00 : f32
    %175 = vector.broadcast %cst_59 : f32 to vector<8x16xf32>
    %176 = vector.broadcast %cst_60 : f32 to vector<8x16xf32>
    %177 = arith.select %174, %175, %176 : vector<8x16xi1>, vector<8x16xf32>
    %178 = arith.addf %157, %177 : vector<8x16xf32>
    %179 = vector.broadcast %169 : vector<1x1xf32> to vector<1x16xf32>
    %180 = arith.cmpf oeq, %31, %179 : vector<1x16xf32>
    %cst_61 = arith.constant -2.000000e+00 : f32
    %181 = vector.broadcast %cst_61 : f32 to vector<1x16xf32>
    %182 = arith.select %180, %181, %161 : vector<1x16xi1>, vector<1x16xf32>
    %cst_62 = arith.constant dense<0xFF800000> : vector<1xf32>
    %183 = vector.multi_reduction <maximumf>, %182, %cst_62 [1] : vector<1x16xf32> to vector<1xf32>
    %184 = vector.shape_cast %183 : vector<1xf32> to vector<1x1xf32>
    %185 = vector.broadcast %184 : vector<1x1xf32> to vector<1x16xf32>
    %186 = arith.cmpf oeq, %182, %185 : vector<1x16xf32>
    %cst_63 = arith.constant 1.600000e+01 : f32
    %187 = vector.broadcast %cst_63 : f32 to vector<1x16xf32>
    %188 = arith.select %186, %31, %187 : vector<1x16xi1>, vector<1x16xf32>
    %cst_64 = arith.constant dense<0x7F800000> : vector<1xf32>
    %189 = vector.multi_reduction <minimumf>, %188, %cst_64 [1] : vector<1x16xf32> to vector<1xf32>
    %190 = vector.shape_cast %189 : vector<1xf32> to vector<1x1xf32>
    %c7_i32 = arith.constant 7 : i32
    %191 = vector.broadcast %c7_i32 : i32 to vector<8x16xi32>
    %192 = arith.cmpi eq, %34, %191 : vector<8x16xi32>
    %193 = vector.broadcast %190 : vector<1x1xf32> to vector<8x16xf32>
    %194 = arith.cmpf oeq, %33, %193 : vector<8x16xf32>
    %195 = arith.andi %192, %194 : vector<8x16xi1>
    %cst_65 = arith.constant 1.000000e+00 : f32
    %cst_66 = arith.constant 0.000000e+00 : f32
    %196 = vector.broadcast %cst_65 : f32 to vector<8x16xf32>
    %197 = vector.broadcast %cst_66 : f32 to vector<8x16xf32>
    %198 = arith.select %195, %196, %197 : vector<8x16xi1>, vector<8x16xf32>
    %199 = arith.addf %178, %198 : vector<8x16xf32>
    %200 = vector.broadcast %29 : vector<1x16xf32> to vector<8x16xf32>
    %201 = arith.mulf %199, %200 : vector<8x16xf32>
    %cst_67 = arith.constant dense<0.000000e+00> : vector<8xf32>
    %202 = vector.multi_reduction <add>, %201, %cst_67 [1] : vector<8x16xf32> to vector<8xf32>
    %203 = vector.shape_cast %202 : vector<8xf32> to vector<8x1xf32>
    %cst_68 = arith.constant dense<0.000000e+00> : vector<8x32xf32>
    %204 = tpu.matmul %199, %19, %cst_68 {dimension_numbers = #tpu.dot_dimension_numbers<[1], [0], [0], [1], [0, 0, 1, 1], [], []>} : vector<8x16xf32>, vector<16x32xf32>, vector<8x32xf32> -> vector<8x32xf32>
    %205 = vector.broadcast %203 : vector<8x1xf32> to vector<8x32xf32>
    %206 = arith.mulf %204, %205 : vector<8x32xf32>
    %cst_69 = arith.constant dense<0.000000e+00> : vector<8x16xf32>
    %207 = tpu.matmul %199, %0, %cst_69 {dimension_numbers = #tpu.dot_dimension_numbers<[1], [0], [0], [1], [0, 0, 1, 1], [], []>} : vector<8x16xf32>, vector<16x16xf32>, vector<8x16xf32> -> vector<8x16xf32>
    %cst_70 = arith.constant dense<0.000000e+00> : vector<8x8xf32>
    %208 = tpu.matmul %207, %199, %cst_70 {dimension_numbers = #tpu.dot_dimension_numbers<[1], [1], [0], [0], [0, 0, 1, 0], [], []>} : vector<8x16xf32>, vector<8x16xf32>, vector<8x8xf32> -> vector<8x8xf32>
    %c0_71 = arith.constant 0 : index
    %c0_72 = arith.constant 0 : index
    %209 = vector.load %arg7[%c0_71, %c0_72] : memref<32x32xf32, #tpu.memory_space<vmem>>, vector<32x32xf32>
    %c0_73 = arith.constant 0 : index
    %c0_74 = arith.constant 0 : index
    %210 = vector.load %arg8[%c0_73, %c0_74] : memref<1x32xf32, #tpu.memory_space<vmem>>, vector<1x32xf32>
    %cst_75 = arith.constant dense<0.000000e+00> : vector<8xf32>
    %211 = vector.multi_reduction <add>, %208, %cst_75 [1] : vector<8x8xf32> to vector<8xf32>
    %212 = vector.shape_cast %211 : vector<8xf32> to vector<8x1xf32>
    %cst_76 = arith.constant 1.000000e+00 : f32
    %213 = vector.broadcast %cst_76 : f32 to vector<8x1xf32>
    %214 = arith.addf %212, %213 : vector<8x1xf32>
    %215 = math.rsqrt %214 : vector<8x1xf32>
    %cst_77 = arith.constant dense<0.000000e+00> : vector<8x32xf32>
    %216 = tpu.matmul %206, %209, %cst_77 {dimension_numbers = #tpu.dot_dimension_numbers<[1], [0], [0], [1], [0, 0, 1, 1], [], []>} : vector<8x32xf32>, vector<32x32xf32>, vector<8x32xf32> -> vector<8x32xf32>
    %217 = vector.broadcast %215 : vector<8x1xf32> to vector<8x32xf32>
    %218 = arith.mulf %217, %216 : vector<8x32xf32>
    %cst_78 = arith.constant dense<0.000000e+00> : vector<8x32xf32>
    %219 = tpu.matmul %208, %218, %cst_78 {dimension_numbers = #tpu.dot_dimension_numbers<[1], [0], [0], [1], [0, 0, 1, 1], [], []>} : vector<8x8xf32>, vector<8x32xf32>, vector<8x32xf32> -> vector<8x32xf32>
    %220 = arith.addf %219, %218 : vector<8x32xf32>
    %221 = vector.broadcast %215 : vector<8x1xf32> to vector<8x32xf32>
    %222 = arith.mulf %221, %220 : vector<8x32xf32>
    %223 = vector.broadcast %210 : vector<1x32xf32> to vector<8x32xf32>
    %224 = arith.addf %222, %223 : vector<8x32xf32>
    %cst_79 = arith.constant 0.000000e+00 : f32
    %225 = vector.broadcast %cst_79 : f32 to vector<8x32xf32>
    %226 = arith.maximumf %224, %225 : vector<8x32xf32>
    %c0_80 = arith.constant 0 : index
    %c0_81 = arith.constant 0 : index
    %227 = vector.load %arg9[%c0_80, %c0_81] : memref<1x32xf32, #tpu.memory_space<vmem>>, vector<1x32xf32>
    %c0_82 = arith.constant 0 : index
    %c0_83 = arith.constant 0 : index
    %228 = vector.load %arg10[%c0_82, %c0_83] : memref<1x32xf32, #tpu.memory_space<vmem>>, vector<1x32xf32>
    %c0_84 = arith.constant 0 : index
    %229 = memref.load %arg11[%c0_84] : memref<1xf32, #tpu.memory_space<smem>>
    %cst_85 = arith.constant dense<0.000000e+00> : vector<1x8xf32>
    %230 = tpu.matmul %228, %226, %cst_85 {dimension_numbers = #tpu.dot_dimension_numbers<[1], [1], [0], [0], [0, 0, 1, 0], [], []>} : vector<1x32xf32>, vector<8x32xf32>, vector<1x8xf32> -> vector<1x8xf32>
    %cst_86 = arith.constant dense<0.000000e+00> : vector<1x8xf32>
    %231 = tpu.matmul %227, %226, %cst_86 {dimension_numbers = #tpu.dot_dimension_numbers<[1], [1], [0], [0], [0, 0, 1, 0], [], []>} : vector<1x32xf32>, vector<8x32xf32>, vector<1x8xf32> -> vector<1x8xf32>
    %cst_87 = arith.constant dense<0.000000e+00> : vector<1x8xf32>
    %232 = tpu.matmul %230, %208, %cst_87 {dimension_numbers = #tpu.dot_dimension_numbers<[1], [0], [0], [1], [0, 0, 1, 1], [], []>} : vector<1x8xf32>, vector<8x8xf32>, vector<1x8xf32> -> vector<1x8xf32>
    %233 = arith.addf %232, %231 : vector<1x8xf32>
    %234 = vector.broadcast %229 : f32 to vector<1x8xf32>
    %235 = arith.addf %233, %234 : vector<1x8xf32>
    %236 = math.tanh %235 : vector<1x8xf32>
    %237 = tpu.iota {dimensions = array<i32: 1>} : vector<1x8xi32>
    %238 = arith.sitofp %237 : vector<1x8xi32> to vector<1x8xf32>
    %239 = tpu.iota {dimensions = array<i32: 1>} : vector<4x8xi32>
    %240 = arith.sitofp %239 : vector<4x8xi32> to vector<4x8xf32>
    %241 = tpu.iota {dimensions = array<i32: 0>} : vector<4x8xi32>
    %cst_88 = arith.constant 0.000000e+00 : f32
    %242 = vector.broadcast %cst_88 : f32 to vector<4x8xf32>
    %cst_89 = arith.constant dense<0xFF800000> : vector<1xf32>
    %243 = vector.multi_reduction <maximumf>, %236, %cst_89 [1] : vector<1x8xf32> to vector<1xf32>
    %244 = vector.shape_cast %243 : vector<1xf32> to vector<1x1xf32>
    %245 = vector.broadcast %244 : vector<1x1xf32> to vector<1x8xf32>
    %246 = arith.cmpf oeq, %236, %245 : vector<1x8xf32>
    %cst_90 = arith.constant 8.000000e+00 : f32
    %247 = vector.broadcast %cst_90 : f32 to vector<1x8xf32>
    %248 = arith.select %246, %238, %247 : vector<1x8xi1>, vector<1x8xf32>
    %cst_91 = arith.constant dense<0x7F800000> : vector<1xf32>
    %249 = vector.multi_reduction <minimumf>, %248, %cst_91 [1] : vector<1x8xf32> to vector<1xf32>
    %250 = vector.shape_cast %249 : vector<1xf32> to vector<1x1xf32>
    %c0_i32_92 = arith.constant 0 : i32
    %251 = vector.broadcast %c0_i32_92 : i32 to vector<4x8xi32>
    %252 = arith.cmpi eq, %241, %251 : vector<4x8xi32>
    %253 = vector.broadcast %250 : vector<1x1xf32> to vector<4x8xf32>
    %254 = arith.cmpf oeq, %240, %253 : vector<4x8xf32>
    %255 = arith.andi %252, %254 : vector<4x8xi1>
    %cst_93 = arith.constant 1.000000e+00 : f32
    %cst_94 = arith.constant 0.000000e+00 : f32
    %256 = vector.broadcast %cst_93 : f32 to vector<4x8xf32>
    %257 = vector.broadcast %cst_94 : f32 to vector<4x8xf32>
    %258 = arith.select %255, %256, %257 : vector<4x8xi1>, vector<4x8xf32>
    %259 = arith.addf %242, %258 : vector<4x8xf32>
    %260 = vector.broadcast %250 : vector<1x1xf32> to vector<1x8xf32>
    %261 = arith.cmpf oeq, %238, %260 : vector<1x8xf32>
    %cst_95 = arith.constant -2.000000e+00 : f32
    %262 = vector.broadcast %cst_95 : f32 to vector<1x8xf32>
    %263 = arith.select %261, %262, %236 : vector<1x8xi1>, vector<1x8xf32>
    %cst_96 = arith.constant dense<0xFF800000> : vector<1xf32>
    %264 = vector.multi_reduction <maximumf>, %263, %cst_96 [1] : vector<1x8xf32> to vector<1xf32>
    %265 = vector.shape_cast %264 : vector<1xf32> to vector<1x1xf32>
    %266 = vector.broadcast %265 : vector<1x1xf32> to vector<1x8xf32>
    %267 = arith.cmpf oeq, %263, %266 : vector<1x8xf32>
    %cst_97 = arith.constant 8.000000e+00 : f32
    %268 = vector.broadcast %cst_97 : f32 to vector<1x8xf32>
    %269 = arith.select %267, %238, %268 : vector<1x8xi1>, vector<1x8xf32>
    %cst_98 = arith.constant dense<0x7F800000> : vector<1xf32>
    %270 = vector.multi_reduction <minimumf>, %269, %cst_98 [1] : vector<1x8xf32> to vector<1xf32>
    %271 = vector.shape_cast %270 : vector<1xf32> to vector<1x1xf32>
    %c1_i32_99 = arith.constant 1 : i32
    %272 = vector.broadcast %c1_i32_99 : i32 to vector<4x8xi32>
    %273 = arith.cmpi eq, %241, %272 : vector<4x8xi32>
    %274 = vector.broadcast %271 : vector<1x1xf32> to vector<4x8xf32>
    %275 = arith.cmpf oeq, %240, %274 : vector<4x8xf32>
    %276 = arith.andi %273, %275 : vector<4x8xi1>
    %cst_100 = arith.constant 1.000000e+00 : f32
    %cst_101 = arith.constant 0.000000e+00 : f32
    %277 = vector.broadcast %cst_100 : f32 to vector<4x8xf32>
    %278 = vector.broadcast %cst_101 : f32 to vector<4x8xf32>
    %279 = arith.select %276, %277, %278 : vector<4x8xi1>, vector<4x8xf32>
    %280 = arith.addf %259, %279 : vector<4x8xf32>
    %281 = vector.broadcast %271 : vector<1x1xf32> to vector<1x8xf32>
    %282 = arith.cmpf oeq, %238, %281 : vector<1x8xf32>
    %cst_102 = arith.constant -2.000000e+00 : f32
    %283 = vector.broadcast %cst_102 : f32 to vector<1x8xf32>
    %284 = arith.select %282, %283, %263 : vector<1x8xi1>, vector<1x8xf32>
    %cst_103 = arith.constant dense<0xFF800000> : vector<1xf32>
    %285 = vector.multi_reduction <maximumf>, %284, %cst_103 [1] : vector<1x8xf32> to vector<1xf32>
    %286 = vector.shape_cast %285 : vector<1xf32> to vector<1x1xf32>
    %287 = vector.broadcast %286 : vector<1x1xf32> to vector<1x8xf32>
    %288 = arith.cmpf oeq, %284, %287 : vector<1x8xf32>
    %cst_104 = arith.constant 8.000000e+00 : f32
    %289 = vector.broadcast %cst_104 : f32 to vector<1x8xf32>
    %290 = arith.select %288, %238, %289 : vector<1x8xi1>, vector<1x8xf32>
    %cst_105 = arith.constant dense<0x7F800000> : vector<1xf32>
    %291 = vector.multi_reduction <minimumf>, %290, %cst_105 [1] : vector<1x8xf32> to vector<1xf32>
    %292 = vector.shape_cast %291 : vector<1xf32> to vector<1x1xf32>
    %c2_i32_106 = arith.constant 2 : i32
    %293 = vector.broadcast %c2_i32_106 : i32 to vector<4x8xi32>
    %294 = arith.cmpi eq, %241, %293 : vector<4x8xi32>
    %295 = vector.broadcast %292 : vector<1x1xf32> to vector<4x8xf32>
    %296 = arith.cmpf oeq, %240, %295 : vector<4x8xf32>
    %297 = arith.andi %294, %296 : vector<4x8xi1>
    %cst_107 = arith.constant 1.000000e+00 : f32
    %cst_108 = arith.constant 0.000000e+00 : f32
    %298 = vector.broadcast %cst_107 : f32 to vector<4x8xf32>
    %299 = vector.broadcast %cst_108 : f32 to vector<4x8xf32>
    %300 = arith.select %297, %298, %299 : vector<4x8xi1>, vector<4x8xf32>
    %301 = arith.addf %280, %300 : vector<4x8xf32>
    %302 = vector.broadcast %292 : vector<1x1xf32> to vector<1x8xf32>
    %303 = arith.cmpf oeq, %238, %302 : vector<1x8xf32>
    %cst_109 = arith.constant -2.000000e+00 : f32
    %304 = vector.broadcast %cst_109 : f32 to vector<1x8xf32>
    %305 = arith.select %303, %304, %284 : vector<1x8xi1>, vector<1x8xf32>
    %cst_110 = arith.constant dense<0xFF800000> : vector<1xf32>
    %306 = vector.multi_reduction <maximumf>, %305, %cst_110 [1] : vector<1x8xf32> to vector<1xf32>
    %307 = vector.shape_cast %306 : vector<1xf32> to vector<1x1xf32>
    %308 = vector.broadcast %307 : vector<1x1xf32> to vector<1x8xf32>
    %309 = arith.cmpf oeq, %305, %308 : vector<1x8xf32>
    %cst_111 = arith.constant 8.000000e+00 : f32
    %310 = vector.broadcast %cst_111 : f32 to vector<1x8xf32>
    %311 = arith.select %309, %238, %310 : vector<1x8xi1>, vector<1x8xf32>
    %cst_112 = arith.constant dense<0x7F800000> : vector<1xf32>
    %312 = vector.multi_reduction <minimumf>, %311, %cst_112 [1] : vector<1x8xf32> to vector<1xf32>
    %313 = vector.shape_cast %312 : vector<1xf32> to vector<1x1xf32>
    %c3_i32_113 = arith.constant 3 : i32
    %314 = vector.broadcast %c3_i32_113 : i32 to vector<4x8xi32>
    %315 = arith.cmpi eq, %241, %314 : vector<4x8xi32>
    %316 = vector.broadcast %313 : vector<1x1xf32> to vector<4x8xf32>
    %317 = arith.cmpf oeq, %240, %316 : vector<4x8xf32>
    %318 = arith.andi %315, %317 : vector<4x8xi1>
    %cst_114 = arith.constant 1.000000e+00 : f32
    %cst_115 = arith.constant 0.000000e+00 : f32
    %319 = vector.broadcast %cst_114 : f32 to vector<4x8xf32>
    %320 = vector.broadcast %cst_115 : f32 to vector<4x8xf32>
    %321 = arith.select %318, %319, %320 : vector<4x8xi1>, vector<4x8xf32>
    %322 = arith.addf %301, %321 : vector<4x8xf32>
    %323 = vector.broadcast %236 : vector<1x8xf32> to vector<4x8xf32>
    %324 = arith.mulf %322, %323 : vector<4x8xf32>
    %cst_116 = arith.constant dense<0.000000e+00> : vector<4xf32>
    %325 = vector.multi_reduction <add>, %324, %cst_116 [1] : vector<4x8xf32> to vector<4xf32>
    %326 = vector.shape_cast %325 : vector<4xf32> to vector<4x1xf32>
    %cst_117 = arith.constant dense<0.000000e+00> : vector<4x32xf32>
    %327 = tpu.matmul %322, %226, %cst_117 {dimension_numbers = #tpu.dot_dimension_numbers<[1], [0], [0], [1], [0, 0, 1, 1], [], []>} : vector<4x8xf32>, vector<8x32xf32>, vector<4x32xf32> -> vector<4x32xf32>
    %328 = vector.broadcast %326 : vector<4x1xf32> to vector<4x32xf32>
    %329 = arith.mulf %327, %328 : vector<4x32xf32>
    %cst_118 = arith.constant dense<0.000000e+00> : vector<4x8xf32>
    %330 = tpu.matmul %322, %208, %cst_118 {dimension_numbers = #tpu.dot_dimension_numbers<[1], [0], [0], [1], [0, 0, 1, 1], [], []>} : vector<4x8xf32>, vector<8x8xf32>, vector<4x8xf32> -> vector<4x8xf32>
    %cst_119 = arith.constant dense<0.000000e+00> : vector<4x4xf32>
    %331 = tpu.matmul %330, %322, %cst_119 {dimension_numbers = #tpu.dot_dimension_numbers<[1], [1], [0], [0], [0, 0, 1, 0], [], []>} : vector<4x8xf32>, vector<4x8xf32>, vector<4x4xf32> -> vector<4x4xf32>
    %c0_120 = arith.constant 0 : index
    %c0_121 = arith.constant 0 : index
    %332 = vector.load %arg12[%c0_120, %c0_121] : memref<32x32xf32, #tpu.memory_space<vmem>>, vector<32x32xf32>
    %c0_122 = arith.constant 0 : index
    %c0_123 = arith.constant 0 : index
    %333 = vector.load %arg13[%c0_122, %c0_123] : memref<1x32xf32, #tpu.memory_space<vmem>>, vector<1x32xf32>
    %cst_124 = arith.constant dense<0.000000e+00> : vector<4xf32>
    %334 = vector.multi_reduction <add>, %331, %cst_124 [1] : vector<4x4xf32> to vector<4xf32>
    %335 = vector.shape_cast %334 : vector<4xf32> to vector<4x1xf32>
    %cst_125 = arith.constant 1.000000e+00 : f32
    %336 = vector.broadcast %cst_125 : f32 to vector<4x1xf32>
    %337 = arith.addf %335, %336 : vector<4x1xf32>
    %338 = math.rsqrt %337 : vector<4x1xf32>
    %cst_126 = arith.constant dense<0.000000e+00> : vector<4x32xf32>
    %339 = tpu.matmul %329, %332, %cst_126 {dimension_numbers = #tpu.dot_dimension_numbers<[1], [0], [0], [1], [0, 0, 1, 1], [], []>} : vector<4x32xf32>, vector<32x32xf32>, vector<4x32xf32> -> vector<4x32xf32>
    %340 = vector.broadcast %338 : vector<4x1xf32> to vector<4x32xf32>
    %341 = arith.mulf %340, %339 : vector<4x32xf32>
    %cst_127 = arith.constant dense<0.000000e+00> : vector<4x32xf32>
    %342 = tpu.matmul %331, %341, %cst_127 {dimension_numbers = #tpu.dot_dimension_numbers<[1], [0], [0], [1], [0, 0, 1, 1], [], []>} : vector<4x4xf32>, vector<4x32xf32>, vector<4x32xf32> -> vector<4x32xf32>
    %343 = arith.addf %342, %341 : vector<4x32xf32>
    %344 = vector.broadcast %338 : vector<4x1xf32> to vector<4x32xf32>
    %345 = arith.mulf %344, %343 : vector<4x32xf32>
    %346 = vector.broadcast %333 : vector<1x32xf32> to vector<4x32xf32>
    %347 = arith.addf %345, %346 : vector<4x32xf32>
    %cst_128 = arith.constant 0.000000e+00 : f32
    %348 = vector.broadcast %cst_128 : f32 to vector<4x32xf32>
    %349 = arith.maximumf %347, %348 : vector<4x32xf32>
    %c0_129 = arith.constant 0 : index
    %c0_130 = arith.constant 0 : index
    %350 = vector.load %arg14[%c0_129, %c0_130] : memref<1x32xf32, #tpu.memory_space<vmem>>, vector<1x32xf32>
    %c0_131 = arith.constant 0 : index
    %c0_132 = arith.constant 0 : index
    %351 = vector.load %arg15[%c0_131, %c0_132] : memref<1x32xf32, #tpu.memory_space<vmem>>, vector<1x32xf32>
    %c0_133 = arith.constant 0 : index
    %352 = memref.load %arg16[%c0_133] : memref<1xf32, #tpu.memory_space<smem>>
    %cst_134 = arith.constant dense<0.000000e+00> : vector<1x4xf32>
    %353 = tpu.matmul %351, %349, %cst_134 {dimension_numbers = #tpu.dot_dimension_numbers<[1], [1], [0], [0], [0, 0, 1, 0], [], []>} : vector<1x32xf32>, vector<4x32xf32>, vector<1x4xf32> -> vector<1x4xf32>
    %cst_135 = arith.constant dense<0.000000e+00> : vector<1x4xf32>
    %354 = tpu.matmul %350, %349, %cst_135 {dimension_numbers = #tpu.dot_dimension_numbers<[1], [1], [0], [0], [0, 0, 1, 0], [], []>} : vector<1x32xf32>, vector<4x32xf32>, vector<1x4xf32> -> vector<1x4xf32>
    %cst_136 = arith.constant dense<0.000000e+00> : vector<1x4xf32>
    %355 = tpu.matmul %353, %331, %cst_136 {dimension_numbers = #tpu.dot_dimension_numbers<[1], [0], [0], [1], [0, 0, 1, 1], [], []>} : vector<1x4xf32>, vector<4x4xf32>, vector<1x4xf32> -> vector<1x4xf32>
    %356 = arith.addf %355, %354 : vector<1x4xf32>
    %357 = vector.broadcast %352 : f32 to vector<1x4xf32>
    %358 = arith.addf %356, %357 : vector<1x4xf32>
    %359 = math.tanh %358 : vector<1x4xf32>
    %360 = tpu.iota {dimensions = array<i32: 1>} : vector<1x4xi32>
    %361 = arith.sitofp %360 : vector<1x4xi32> to vector<1x4xf32>
    %362 = tpu.iota {dimensions = array<i32: 1>} : vector<2x4xi32>
    %363 = arith.sitofp %362 : vector<2x4xi32> to vector<2x4xf32>
    %364 = tpu.iota {dimensions = array<i32: 0>} : vector<2x4xi32>
    %cst_137 = arith.constant 0.000000e+00 : f32
    %365 = vector.broadcast %cst_137 : f32 to vector<2x4xf32>
    %cst_138 = arith.constant dense<0xFF800000> : vector<1xf32>
    %366 = vector.multi_reduction <maximumf>, %359, %cst_138 [1] : vector<1x4xf32> to vector<1xf32>
    %367 = vector.shape_cast %366 : vector<1xf32> to vector<1x1xf32>
    %368 = vector.broadcast %367 : vector<1x1xf32> to vector<1x4xf32>
    %369 = arith.cmpf oeq, %359, %368 : vector<1x4xf32>
    %cst_139 = arith.constant 4.000000e+00 : f32
    %370 = vector.broadcast %cst_139 : f32 to vector<1x4xf32>
    %371 = arith.select %369, %361, %370 : vector<1x4xi1>, vector<1x4xf32>
    %cst_140 = arith.constant dense<0x7F800000> : vector<1xf32>
    %372 = vector.multi_reduction <minimumf>, %371, %cst_140 [1] : vector<1x4xf32> to vector<1xf32>
    %373 = vector.shape_cast %372 : vector<1xf32> to vector<1x1xf32>
    %c0_i32_141 = arith.constant 0 : i32
    %374 = vector.broadcast %c0_i32_141 : i32 to vector<2x4xi32>
    %375 = arith.cmpi eq, %364, %374 : vector<2x4xi32>
    %376 = vector.broadcast %373 : vector<1x1xf32> to vector<2x4xf32>
    %377 = arith.cmpf oeq, %363, %376 : vector<2x4xf32>
    %378 = arith.andi %375, %377 : vector<2x4xi1>
    %cst_142 = arith.constant 1.000000e+00 : f32
    %cst_143 = arith.constant 0.000000e+00 : f32
    %379 = vector.broadcast %cst_142 : f32 to vector<2x4xf32>
    %380 = vector.broadcast %cst_143 : f32 to vector<2x4xf32>
    %381 = arith.select %378, %379, %380 : vector<2x4xi1>, vector<2x4xf32>
    %382 = arith.addf %365, %381 : vector<2x4xf32>
    %383 = vector.broadcast %373 : vector<1x1xf32> to vector<1x4xf32>
    %384 = arith.cmpf oeq, %361, %383 : vector<1x4xf32>
    %cst_144 = arith.constant -2.000000e+00 : f32
    %385 = vector.broadcast %cst_144 : f32 to vector<1x4xf32>
    %386 = arith.select %384, %385, %359 : vector<1x4xi1>, vector<1x4xf32>
    %cst_145 = arith.constant dense<0xFF800000> : vector<1xf32>
    %387 = vector.multi_reduction <maximumf>, %386, %cst_145 [1] : vector<1x4xf32> to vector<1xf32>
    %388 = vector.shape_cast %387 : vector<1xf32> to vector<1x1xf32>
    %389 = vector.broadcast %388 : vector<1x1xf32> to vector<1x4xf32>
    %390 = arith.cmpf oeq, %386, %389 : vector<1x4xf32>
    %cst_146 = arith.constant 4.000000e+00 : f32
    %391 = vector.broadcast %cst_146 : f32 to vector<1x4xf32>
    %392 = arith.select %390, %361, %391 : vector<1x4xi1>, vector<1x4xf32>
    %cst_147 = arith.constant dense<0x7F800000> : vector<1xf32>
    %393 = vector.multi_reduction <minimumf>, %392, %cst_147 [1] : vector<1x4xf32> to vector<1xf32>
    %394 = vector.shape_cast %393 : vector<1xf32> to vector<1x1xf32>
    %c1_i32_148 = arith.constant 1 : i32
    %395 = vector.broadcast %c1_i32_148 : i32 to vector<2x4xi32>
    %396 = arith.cmpi eq, %364, %395 : vector<2x4xi32>
    %397 = vector.broadcast %394 : vector<1x1xf32> to vector<2x4xf32>
    %398 = arith.cmpf oeq, %363, %397 : vector<2x4xf32>
    %399 = arith.andi %396, %398 : vector<2x4xi1>
    %cst_149 = arith.constant 1.000000e+00 : f32
    %cst_150 = arith.constant 0.000000e+00 : f32
    %400 = vector.broadcast %cst_149 : f32 to vector<2x4xf32>
    %401 = vector.broadcast %cst_150 : f32 to vector<2x4xf32>
    %402 = arith.select %399, %400, %401 : vector<2x4xi1>, vector<2x4xf32>
    %403 = arith.addf %382, %402 : vector<2x4xf32>
    %404 = vector.broadcast %359 : vector<1x4xf32> to vector<2x4xf32>
    %405 = arith.mulf %403, %404 : vector<2x4xf32>
    %cst_151 = arith.constant dense<0.000000e+00> : vector<2xf32>
    %406 = vector.multi_reduction <add>, %405, %cst_151 [1] : vector<2x4xf32> to vector<2xf32>
    %407 = vector.shape_cast %406 : vector<2xf32> to vector<2x1xf32>
    %cst_152 = arith.constant dense<0.000000e+00> : vector<2x32xf32>
    %408 = tpu.matmul %403, %349, %cst_152 {dimension_numbers = #tpu.dot_dimension_numbers<[1], [0], [0], [1], [0, 0, 1, 1], [], []>} : vector<2x4xf32>, vector<4x32xf32>, vector<2x32xf32> -> vector<2x32xf32>
    %409 = vector.broadcast %407 : vector<2x1xf32> to vector<2x32xf32>
    %410 = arith.mulf %408, %409 : vector<2x32xf32>
    %cst_153 = arith.constant dense<0.000000e+00> : vector<2x4xf32>
    %411 = tpu.matmul %403, %331, %cst_153 {dimension_numbers = #tpu.dot_dimension_numbers<[1], [0], [0], [1], [0, 0, 1, 1], [], []>} : vector<2x4xf32>, vector<4x4xf32>, vector<2x4xf32> -> vector<2x4xf32>
    %cst_154 = arith.constant dense<0.000000e+00> : vector<2x2xf32>
    %412 = tpu.matmul %411, %403, %cst_154 {dimension_numbers = #tpu.dot_dimension_numbers<[1], [1], [0], [0], [0, 0, 1, 0], [], []>} : vector<2x4xf32>, vector<2x4xf32>, vector<2x2xf32> -> vector<2x2xf32>
    %c0_155 = arith.constant 0 : index
    %c0_156 = arith.constant 0 : index
    %413 = vector.load %arg17[%c0_155, %c0_156] : memref<32x32xf32, #tpu.memory_space<vmem>>, vector<32x32xf32>
    %c0_157 = arith.constant 0 : index
    %c0_158 = arith.constant 0 : index
    %414 = vector.load %arg18[%c0_157, %c0_158] : memref<1x32xf32, #tpu.memory_space<vmem>>, vector<1x32xf32>
    %cst_159 = arith.constant dense<0.000000e+00> : vector<2xf32>
    %415 = vector.multi_reduction <add>, %412, %cst_159 [1] : vector<2x2xf32> to vector<2xf32>
    %416 = vector.shape_cast %415 : vector<2xf32> to vector<2x1xf32>
    %cst_160 = arith.constant 1.000000e+00 : f32
    %417 = vector.broadcast %cst_160 : f32 to vector<2x1xf32>
    %418 = arith.addf %416, %417 : vector<2x1xf32>
    %419 = math.rsqrt %418 : vector<2x1xf32>
    %cst_161 = arith.constant dense<0.000000e+00> : vector<2x32xf32>
    %420 = tpu.matmul %410, %413, %cst_161 {dimension_numbers = #tpu.dot_dimension_numbers<[1], [0], [0], [1], [0, 0, 1, 1], [], []>} : vector<2x32xf32>, vector<32x32xf32>, vector<2x32xf32> -> vector<2x32xf32>
    %421 = vector.broadcast %419 : vector<2x1xf32> to vector<2x32xf32>
    %422 = arith.mulf %421, %420 : vector<2x32xf32>
    %cst_162 = arith.constant dense<0.000000e+00> : vector<2x32xf32>
    %423 = tpu.matmul %412, %422, %cst_162 {dimension_numbers = #tpu.dot_dimension_numbers<[1], [0], [0], [1], [0, 0, 1, 1], [], []>} : vector<2x2xf32>, vector<2x32xf32>, vector<2x32xf32> -> vector<2x32xf32>
    %424 = arith.addf %423, %422 : vector<2x32xf32>
    %425 = vector.broadcast %419 : vector<2x1xf32> to vector<2x32xf32>
    %426 = arith.mulf %425, %424 : vector<2x32xf32>
    %427 = vector.broadcast %414 : vector<1x32xf32> to vector<2x32xf32>
    %428 = arith.addf %426, %427 : vector<2x32xf32>
    %cst_163 = arith.constant 0.000000e+00 : f32
    %429 = vector.broadcast %cst_163 : f32 to vector<2x32xf32>
    %430 = arith.maximumf %428, %429 : vector<2x32xf32>
    %c0_164 = arith.constant 0 : index
    %c0_165 = arith.constant 0 : index
    %431 = vector.load %arg19[%c0_164, %c0_165] : memref<1x32xf32, #tpu.memory_space<vmem>>, vector<1x32xf32>
    %c0_166 = arith.constant 0 : index
    %c0_167 = arith.constant 0 : index
    %432 = vector.load %arg20[%c0_166, %c0_167] : memref<1x32xf32, #tpu.memory_space<vmem>>, vector<1x32xf32>
    %c0_168 = arith.constant 0 : index
    %433 = memref.load %arg21[%c0_168] : memref<1xf32, #tpu.memory_space<smem>>
    %cst_169 = arith.constant dense<0.000000e+00> : vector<1x2xf32>
    %434 = tpu.matmul %432, %430, %cst_169 {dimension_numbers = #tpu.dot_dimension_numbers<[1], [1], [0], [0], [0, 0, 1, 0], [], []>} : vector<1x32xf32>, vector<2x32xf32>, vector<1x2xf32> -> vector<1x2xf32>
    %cst_170 = arith.constant dense<0.000000e+00> : vector<1x2xf32>
    %435 = tpu.matmul %431, %430, %cst_170 {dimension_numbers = #tpu.dot_dimension_numbers<[1], [1], [0], [0], [0, 0, 1, 0], [], []>} : vector<1x32xf32>, vector<2x32xf32>, vector<1x2xf32> -> vector<1x2xf32>
    %cst_171 = arith.constant dense<0.000000e+00> : vector<1x2xf32>
    %436 = tpu.matmul %434, %412, %cst_171 {dimension_numbers = #tpu.dot_dimension_numbers<[1], [0], [0], [1], [0, 0, 1, 1], [], []>} : vector<1x2xf32>, vector<2x2xf32>, vector<1x2xf32> -> vector<1x2xf32>
    %437 = arith.addf %436, %435 : vector<1x2xf32>
    %438 = vector.broadcast %433 : f32 to vector<1x2xf32>
    %439 = arith.addf %437, %438 : vector<1x2xf32>
    %440 = math.tanh %439 : vector<1x2xf32>
    %441 = tpu.iota {dimensions = array<i32: 1>} : vector<1x2xi32>
    %442 = arith.sitofp %441 : vector<1x2xi32> to vector<1x2xf32>
    %443 = tpu.iota {dimensions = array<i32: 1>} : vector<1x2xi32>
    %444 = arith.sitofp %443 : vector<1x2xi32> to vector<1x2xf32>
    %445 = tpu.iota {dimensions = array<i32: 0>} : vector<1x2xi32>
    %cst_172 = arith.constant 0.000000e+00 : f32
    %446 = vector.broadcast %cst_172 : f32 to vector<1x2xf32>
    %cst_173 = arith.constant dense<0xFF800000> : vector<1xf32>
    %447 = vector.multi_reduction <maximumf>, %440, %cst_173 [1] : vector<1x2xf32> to vector<1xf32>
    %448 = vector.shape_cast %447 : vector<1xf32> to vector<1x1xf32>
    %449 = vector.broadcast %448 : vector<1x1xf32> to vector<1x2xf32>
    %450 = arith.cmpf oeq, %440, %449 : vector<1x2xf32>
    %cst_174 = arith.constant 2.000000e+00 : f32
    %451 = vector.broadcast %cst_174 : f32 to vector<1x2xf32>
    %452 = arith.select %450, %442, %451 : vector<1x2xi1>, vector<1x2xf32>
    %cst_175 = arith.constant dense<0x7F800000> : vector<1xf32>
    %453 = vector.multi_reduction <minimumf>, %452, %cst_175 [1] : vector<1x2xf32> to vector<1xf32>
    %454 = vector.shape_cast %453 : vector<1xf32> to vector<1x1xf32>
    %c0_i32_176 = arith.constant 0 : i32
    %455 = vector.broadcast %c0_i32_176 : i32 to vector<1x2xi32>
    %456 = arith.cmpi eq, %445, %455 : vector<1x2xi32>
    %457 = vector.broadcast %454 : vector<1x1xf32> to vector<1x2xf32>
    %458 = arith.cmpf oeq, %444, %457 : vector<1x2xf32>
    %459 = arith.andi %456, %458 : vector<1x2xi1>
    %cst_177 = arith.constant 1.000000e+00 : f32
    %cst_178 = arith.constant 0.000000e+00 : f32
    %460 = vector.broadcast %cst_177 : f32 to vector<1x2xf32>
    %461 = vector.broadcast %cst_178 : f32 to vector<1x2xf32>
    %462 = arith.select %459, %460, %461 : vector<1x2xi1>, vector<1x2xf32>
    %463 = arith.addf %446, %462 : vector<1x2xf32>
    %464 = arith.mulf %463, %440 : vector<1x2xf32>
    %cst_179 = arith.constant dense<0.000000e+00> : vector<1xf32>
    %465 = vector.multi_reduction <add>, %464, %cst_179 [1] : vector<1x2xf32> to vector<1xf32>
    %466 = vector.shape_cast %465 : vector<1xf32> to vector<1x1xf32>
    %cst_180 = arith.constant dense<0.000000e+00> : vector<1x32xf32>
    %467 = tpu.matmul %463, %430, %cst_180 {dimension_numbers = #tpu.dot_dimension_numbers<[1], [0], [0], [1], [0, 0, 1, 1], [], []>} : vector<1x2xf32>, vector<2x32xf32>, vector<1x32xf32> -> vector<1x32xf32>
    %468 = vector.broadcast %466 : vector<1x1xf32> to vector<1x32xf32>
    %469 = arith.mulf %467, %468 : vector<1x32xf32>
    %c0_181 = arith.constant 0 : index
    %c0_182 = arith.constant 0 : index
    %470 = vector.load %arg22[%c0_181, %c0_182] : memref<32x32xf32, #tpu.memory_space<vmem>>, vector<32x32xf32>
    %cst_183 = arith.constant dense<0.000000e+00> : vector<1x32xf32>
    %471 = tpu.matmul %469, %470, %cst_183 {dimension_numbers = #tpu.dot_dimension_numbers<[1], [0], [0], [1], [0, 0, 1, 1], [], []>} : vector<1x32xf32>, vector<32x32xf32>, vector<1x32xf32> -> vector<1x32xf32>
    %c0_184 = arith.constant 0 : index
    %c0_185 = arith.constant 0 : index
    %472 = vector.load %arg23[%c0_184, %c0_185] : memref<1x32xf32, #tpu.memory_space<vmem>>, vector<1x32xf32>
    %473 = arith.addf %471, %472 : vector<1x32xf32>
    %cst_186 = arith.constant dense<0xFF800000> : vector<1xf32>
    %474 = vector.multi_reduction <maximumf>, %473, %cst_186 [1] : vector<1x32xf32> to vector<1xf32>
    %475 = vector.shape_cast %474 : vector<1xf32> to vector<1x1xf32>
    %476 = vector.broadcast %475 : vector<1x1xf32> to vector<1x32xf32>
    %477 = arith.subf %473, %476 : vector<1x32xf32>
    %478 = math.exp %477 : vector<1x32xf32>
    %cst_187 = arith.constant dense<0.000000e+00> : vector<1xf32>
    %479 = vector.multi_reduction <add>, %478, %cst_187 [1] : vector<1x32xf32> to vector<1xf32>
    %480 = vector.shape_cast %479 : vector<1xf32> to vector<1x1xf32>
    %481 = math.log %480 : vector<1x1xf32>
    %482 = vector.broadcast %475 : vector<1x1xf32> to vector<1x32xf32>
    %483 = arith.subf %473, %482 : vector<1x32xf32>
    %484 = vector.broadcast %481 : vector<1x1xf32> to vector<1x32xf32>
    %485 = arith.subf %483, %484 : vector<1x32xf32>
    %c0_188 = arith.constant 0 : index
    %c0_189 = arith.constant 0 : index
    %486 = vector.load %arg24[%c0_188, %c0_189] : memref<1x32xf32, #tpu.memory_space<vmem>>, vector<1x32xf32>
    tpu.vector_store %arg24[%c0_188, %c0_189], %485 {strides = array<i32>} : memref<1x32xf32, #tpu.memory_space<vmem>>, vector<1x32xf32>,
    return
  }
}

</mosaic_0001>

<bundles_post_ra>
// kernel: _lambda_.1
= control target key start
LH: loop header
LB: loop body
LE: loop exit
PB: predicated region body
PF: predicated region fallthrough
CT: control target
= control target key end

     0   :  { %s4364_s0 = inlined_call_operand.vmem [shape: f32[16,16], index: 0, kind: input, shape index: {}]   ;;  %s4365_s1 = inlined_call_operand.vmem [shape: f32[16,8], index: 1, kind: input, shape index: {}]   ;;  %s4366_s2 = inlined_call_operand.hbm [shape: f32[8,32], index: 2, kind: input, shape index: {}]   ;;  %s4367_s3 = inlined_call_operand.hbm [shape: f32[1,32], index: 3, kind: input, shape index: {}]   ;;  %s4368_s4 = inlined_call_operand.hbm [shape: f32[1,32], index: 4, kind: input, shape index: {}]   ;;  %s4369_s5 = inlined_call_operand.hbm [shape: f32[1,32], index: 5, kind: input, shape index: {}]   ;;  %s4370_s6 = inlined_call_operand.<no memory space> [shape: f32[1], index: 6, kind: input, shape index: {}]   ;;  %s4371_s7 = inlined_call_operand.vmem [shape: f32[32,32], index: 7, kind: input, shape index: {}]   ;;  %s4372_s8 = inlined_call_operand.hbm [shape: f32[1,32], index: 8, kind: input, shape index: {}]   ;;  %s4373_s9 = inlined_call_operand.hbm [shape: f32[1,32], index: 9, kind: input, shape index: {}]   ;;  %s4374_s10 = inlined_call_operand.hbm [shape: f32[1,32], index: 10, kind: input, shape index: {}]   ;;  %s4375_s11 = inlined_call_operand.<no memory space> [shape: f32[1], index: 11, kind: input, shape index: {}]   ;;  %s4376_s12 = inlined_call_operand.hbm [shape: f32[32,32], index: 12, kind: input, shape index: {}]   ;;  %s4377_s13 = inlined_call_operand.hbm [shape: f32[1,32], index: 13, kind: input, shape index: {}]   ;;  %s4378_s14 = inlined_call_operand.hbm [shape: f32[1,32], index: 14, kind: input, shape index: {}]   ;;  %s4379_s15 = inlined_call_operand.hbm [shape: f32[1,32], index: 15, kind: input, shape index: {}]   ;;  %s4380_s16 = inlined_call_operand.<no memory space> [shape: f32[1], index: 16, kind: input, shape index: {}]   ;;  %s4381_s17 = inlined_call_operand.vmem [shape: f32[32,32], index: 17, kind: input, shape index: {}]   ;;  %s4382_s18 = inlined_call_operand.hbm [shape: f32[1,32], index: 18, kind: input, shape index: {}]   ;;  %s4383_s19 = inlined_call_operand.hbm [shape: f32[1,32], index: 19, kind: input, shape index: {}]   ;;  %s4384_s20 = inlined_call_operand.hbm [shape: f32[1,32], index: 20, kind: input, shape index: {}]   ;;  %s4385_s21 = inlined_call_operand.<no memory space> [shape: f32[1], index: 21, kind: input, shape index: {}]   ;;  %s4386_s22 = inlined_call_operand.hbm [shape: f32[32,32], index: 22, kind: input, shape index: {}]   ;;  %s4387_s23 = inlined_call_operand.hbm [shape: f32[1,32], index: 23, kind: input, shape index: {}]   ;;  %s4388_s24 = inlined_call_operand.hbm [shape: f32[1,32], index: 24, kind: output, shape index: {}]  }
   0x1   :  { %4396 = sst [smem:[#allocation43_spill]] %s4364_s0 }
   0x2   :  { %4397 = sst [smem:[#allocation44_spill]] %s4365_s1 }
   0x3   :  { %4398 = sst [smem:[#allocation45_spill]] %s4366_s2 }
   0x4   :  { %4399 = sst [smem:[#allocation46_spill]] %s4367_s3 }
   0x5   :  { %4400 = sst [smem:[#allocation47_spill]] %s4368_s4 }
   0x6   :  { %4401 = sst [smem:[#allocation48_spill]] %s4369_s5 }
   0x7   :  { %4402 = sst [smem:[#allocation49_spill]] %s4370_s6 }
   0x8   :  { %4403 = sst [smem:[#allocation50_spill]] %s4371_s7 }
   0x9   :  { %4404 = sst [smem:[#allocation51_spill]] %s4372_s8 }
   0xa   :  { %33 = vsyncpa [#allocation7], 0 }
   0xb   :  { %34 = vsyncpa [#allocation10], 0 }
   0xc   :  { %35 = vsyncpa [#allocation13], 0 }
   0xd   :  { %36 = vsyncpa [#allocation16], 0 }
   0xe   :  { %37 = vsyncpa [#allocation19], 0 }
   0xf   :  { %38 = vsyncpa [#allocation22], 0 }
  0x10   :  { %39 = vsyncpa [#allocation25], 0 }
  0x11   :  { %40 = vsyncpa [#allocation28], 0 }
  0x12   :  { %41 = vsyncpa [#allocation31], 0 }
  0x13   :  { %42 = vsyncpa [#allocation8], 0  ;;  %s3777_s5 = smov [#allocation9]   ;;  %s3778_s27 = smov [#allocation12]  }
  0x14   :  { %s63_s26 = sshll.u32 %s3777_s5, 4  ;;  %s83_s28 = sshll.u32 %s3778_s27, 4  ;;  %s64_s26 = int_to_ptr.vmem [resolvable:$true] %s63_s26  ;;  %s84_s28 = int_to_ptr.vmem [resolvable:$true] %s83_s28 }
  0x15   :  { %s3425_s6 = scalar_lea.vmem %s64_s26, 16  ;;  %s3429_s2 = scalar_lea.vmem %s64_s26, 32 }
  0x16   :  { %p3426_p0 = scmp.ne.s32.totalorder %s64_s26, %s3425_s6  ;;  %p3430_p1 = scmp.lt.s32.totalorder %s64_s26, %s64_s26 }
  0x17   :  { %p3431_p2 = scmp.lt.s32.totalorder %s3429_s2, %s3425_s6 }
  0x19   :  { %p3432_p3 = por %p3431_p2, %p3430_p1 }
  0x1b   :  { %p3433_p4 = pnand %p3432_p3, %p3426_p0 }
  0x1d   :  { %3436 = shalt.err (!%p3433_p4)
}
  0x1e   :  { %s4405_s7 = sld [smem:[#allocation46_spill]]  ;;  %s3445_s30 = scalar_lea.vmem %s84_s28, 16 }
  0x1f   :  { %p3446_p5 = scmp.ne.s32.totalorder %s84_s28, %s3445_s30  ;;  %s3449_s3 = scalar_lea.vmem %s84_s28, 32 }
  0x20   :  { %p3450_p6 = scmp.lt.s32.totalorder %s84_s28, %s84_s28  ;;  %p3451_p7 = scmp.lt.s32.totalorder %s3449_s3, %s3445_s30 }
  0x22   :  { %p3452_p8 = por %p3451_p7, %p3450_p6 }
  0x24   :  { %66 = dma.hbm_to_vmem [thread:$0]  %s4405_s7, 16, %s64_s26, [#allocation10]  }
  0x25   :  { %p3453_p9 = pnand %p3452_p8, %p3446_p5 }
  0x27   :  { %3456 = shalt.err (!%p3453_p9)
}
  0x28   :  { %s4406_s4 = sld [smem:[#allocation48_spill]]  ;;  %s3779_s1 = smov [#allocation15]  }
  0x29   :  { %s107_s5 = sshll.u32 %s3779_s1, 4  ;;  %s3780_s27 = smov [#allocation18]   ;;  %s108_s5 = int_to_ptr.vmem [resolvable:$true] %s107_s5 }
  0x2a   :  { %s128_s6 = sshll.u32 %s3780_s27, 4  ;;  %s3465_s2 = scalar_lea.vmem %s108_s5, 16  ;;  %s129_s6 = int_to_ptr.vmem [resolvable:$true] %s128_s6 }
  0x2b   :  { %p3466_p10 = scmp.ne.s32.totalorder %s108_s5, %s3465_s2  ;;  %s3469_s26 = scalar_lea.vmem %s108_s5, 32 }
  0x2c   :  { %p3470_p11 = scmp.lt.s32.totalorder %s108_s5, %s108_s5  ;;  %p3471_p12 = scmp.lt.s32.totalorder %s3469_s26, %s3465_s2 }
  0x2e   :  { %86 = dma.hbm_to_vmem [thread:$0]  %s4406_s4, 16, %s84_s28, [#allocation13]  }
  0x2f   :  { %p3472_p13 = por %p3471_p12, %p3470_p11 }
  0x31   :  { %p3473_p0 = pnand %p3472_p13, %p3466_p10 }
  0x33   :  { %3476 = shalt.err (!%p3473_p0)
}
  0x34   :  { %110 = dma.hbm_to_vmem [thread:$0]  %s4373_s9, 16, %s108_s5, [#allocation16]  }
  0x35   :  { %s3485_s7 = scalar_lea.vmem %s129_s6, 512  ;;  %p3490_p2 = scmp.lt.s32.totalorder %s129_s6, %s129_s6 }
  0x36   :  { %p3486_p1 = scmp.ne.s32.totalorder %s129_s6, %s3485_s7  ;;  %p3491_p3 = scmp.lt.s32.totalorder %s3485_s7, %s3485_s7 }
  0x38   :  { %p3492_p4 = por %p3491_p3, %p3490_p2 }
  0x3a   :  { %p3493_p5 = pnand %p3492_p4, %p3486_p1 }
  0x3c   :  { %3496 = shalt.err (!%p3493_p5)
}
  0x3d   :  { %s3781_s28 = smov 128   ;;  %s3782_s30 = smov 8  }
  0x3e   :  { %134 = dma.hbm_to_vmem [thread:$0]  %s4376_s12, 512, %s129_s6, [#allocation19], %s3781_s28, %s3781_s28, %s3782_s30  }
  0x3f   :  { %s3783_s8 = smov [#allocation21]   ;;  %s3784_s1 = smov [#allocation24]  }
  0x40   :  { %s151_s4 = sshll.u32 %s3783_s8, 4  ;;  %s175_s9 = sshll.u32 %s3784_s1, 4  ;;  %s152_s4 = int_to_ptr.vmem [resolvable:$true] %s151_s4  ;;  %s176_s9 = int_to_ptr.vmem [resolvable:$true] %s175_s9 }
  0x41   :  { %s3505_s5 = scalar_lea.vmem %s152_s4, 16  ;;  %s3509_s27 = scalar_lea.vmem %s152_s4, 32 }
  0x42   :  { %p3506_p6 = scmp.ne.s32.totalorder %s152_s4, %s3505_s5  ;;  %p3510_p7 = scmp.lt.s32.totalorder %s152_s4, %s152_s4 }
  0x43   :  { %p3511_p8 = scmp.lt.s32.totalorder %s3509_s27, %s3505_s5 }
  0x45   :  { %p3512_p9 = por %p3511_p8, %p3510_p7 }
  0x47   :  { %p3513_p10 = pnand %p3512_p9, %p3506_p6 }
  0x49   :  { %3516 = shalt.err (!%p3513_p10)
}
  0x4a   :  { %154 = dma.hbm_to_vmem [thread:$0]  %s4378_s14, 16, %s152_s4, [#allocation22]  }
  0x4b   :  { %s3525_s29 = scalar_lea.vmem %s176_s9, 16  ;;  %s3529_s12 = scalar_lea.vmem %s176_s9, 32 }
  0x4c   :  { %p3526_p11 = scmp.ne.s32.totalorder %s176_s9, %s3525_s29  ;;  %p3530_p12 = scmp.lt.s32.totalorder %s176_s9, %s176_s9 }
  0x4d   :  { %p3531_p13 = scmp.lt.s32.totalorder %s3529_s12, %s3525_s29 }
  0x4f   :  { %p3532_p0 = por %p3531_p13, %p3530_p12 }
  0x51   :  { %p3533_p1 = pnand %p3532_p0, %p3526_p11 }
  0x53   :  { %3536 = shalt.err (!%p3533_p1)
}
  0x54   :  { %178 = dma.hbm_to_vmem [thread:$0]  %s4382_s18, 16, %s176_s9, [#allocation25]  }
  0x55   :  { %s3785_s7 = smov [#allocation27]   ;;  %s3786_s25 = smov [#allocation6]  }
  0x56   :  { %s195_s3 = sshll.u32 %s3785_s7, 4  ;;  %s53_s8 = sshll.u32 %s3786_s25, 4  ;;  %s196_s3 = int_to_ptr.vmem [resolvable:$true] %s195_s3  ;;  %s54_s8 = int_to_ptr.vmem [resolvable:$true] %s53_s8 }
  0x57   :  { %s3545_s1 = scalar_lea.vmem %s196_s3, 16  ;;  %s3549_s14 = scalar_lea.vmem %s196_s3, 32 }
  0x58   :  { %p3546_p2 = scmp.ne.s32.totalorder %s196_s3, %s3545_s1  ;;  %p3550_p3 = scmp.lt.s32.totalorder %s196_s3, %s196_s3 }
  0x59   :  { %p3551_p4 = scmp.lt.s32.totalorder %s3549_s14, %s3545_s1 }
  0x5b   :  { %p3552_p5 = por %p3551_p4, %p3550_p3 }
  0x5d   :  { %p3553_p6 = pnand %p3552_p5, %p3546_p2 }
  0x5f   :  { %3556 = shalt.err (!%p3553_p6)
}
  0x60   :  { %198 = dma.hbm_to_vmem [thread:$0]  %s4384_s20, 16, %s196_s3, [#allocation28]  }
  0x61   :  { %s3565_s27 = scalar_lea.vmem %s54_s8, 128  ;;  %p3570_p8 = scmp.lt.s32.totalorder %s54_s8, %s54_s8 }
  0x62   :  { %p3566_p7 = scmp.ne.s32.totalorder %s54_s8, %s3565_s27  ;;  %p3571_p9 = scmp.lt.s32.totalorder %s3565_s27, %s3565_s27 }
  0x64   :  { %p3572_p10 = por %p3571_p9, %p3570_p8 }
  0x66   :  { %p3573_p11 = pnand %p3572_p10, %p3566_p7 }
  0x68   :  { %3576 = shalt.err (!%p3573_p11)
}
  0x69   :  { %s4407_s2 = sld [smem:[#allocation45_spill]]  ;;  %s3787_s26 = smov [#allocation11]  }
  0x6a   :  { %s73_s29 = sshll.u32 %s3787_s26, 4  ;;  %s3788_s12 = smov [#allocation14]   ;;  %s74_s29 = int_to_ptr.vmem [resolvable:$true] %s73_s29 }
  0x6b   :  { %s97_s6 = sshll.u32 %s3788_s12, 4  ;;  %s3585_s0 = scalar_lea.vmem %s74_s29, 16  ;;  %s98_s6 = int_to_ptr.vmem [resolvable:$true] %s97_s6 }
  0x6c   :  { %p3586_p12 = scmp.ne.s32.totalorder %s74_s29, %s3585_s0  ;;  %s3589_s20 = scalar_lea.vmem %s74_s29, 32 }
  0x6d   :  { %p3590_p13 = scmp.lt.s32.totalorder %s74_s29, %s74_s29  ;;  %p3591_p0 = scmp.lt.s32.totalorder %s3589_s20, %s3585_s0 }
  0x6f   :  { %56 = dma.hbm_to_vmem [thread:$0]  %s4407_s2, 128, %s54_s8, [#allocation7]  }
  0x70   :  { %p3592_p1 = por %p3591_p0, %p3590_p13 }
  0x72   :  { %p3593_p2 = pnand %p3592_p1, %p3586_p12 }
  0x74   :  { %3596 = shalt.err (!%p3593_p2)
}
  0x75   :  { %s4408_s25 = sld [smem:[#allocation47_spill]]  ;;  %s3605_s1 = scalar_lea.vmem %s98_s6, 16 }
  0x76   :  { %p3606_p3 = scmp.ne.s32.totalorder %s98_s6, %s3605_s1  ;;  %s3609_s8 = scalar_lea.vmem %s98_s6, 32 }
  0x77   :  { %p3610_p4 = scmp.lt.s32.totalorder %s98_s6, %s98_s6  ;;  %p3611_p5 = scmp.lt.s32.totalorder %s3609_s8, %s3605_s1 }
  0x79   :  { %p3612_p6 = por %p3611_p5, %p3610_p4 }
  0x7b   :  { %76 = dma.hbm_to_vmem [thread:$0]  %s4408_s25, 16, %s74_s29, [#allocation10]  }
  0x7c   :  { %p3613_p7 = pnand %p3612_p6, %p3606_p3 }
  0x7e   :  { %3616 = shalt.err (!%p3613_p7)
}
  0x7f   :  { %s4409_s5 = sld [smem:[#allocation51_spill]]  ;;  %s3789_s27 = smov [#allocation17]  }
  0x80   :  { %s117_s18 = sshll.u32 %s3789_s27, 4  ;;  %s3790_s9 = smov [#allocation20]   ;;  %s118_s18 = int_to_ptr.vmem [resolvable:$true] %s117_s18 }
  0x81   :  { %s141_s2 = sshll.u32 %s3790_s9, 4  ;;  %s3625_s26 = scalar_lea.vmem %s118_s18, 16  ;;  %s142_s2 = int_to_ptr.vmem [resolvable:$true] %s141_s2 }
  0x82   :  { %p3626_p8 = scmp.ne.s32.totalorder %s118_s18, %s3625_s26  ;;  %s3629_s29 = scalar_lea.vmem %s118_s18, 32 }
  0x83   :  { %p3630_p9 = scmp.lt.s32.totalorder %s118_s18, %s118_s18  ;;  %p3631_p10 = scmp.lt.s32.totalorder %s3629_s29, %s3625_s26 }
  0x85   :  { %100 = dma.hbm_to_vmem [thread:$0]  %s4409_s5, 16, %s98_s6, [#allocation13]  }
  0x86   :  { %p3632_p11 = por %p3631_p10, %p3630_p9 }
  0x88   :  { %p3633_p12 = pnand %p3632_p11, %p3626_p8 }
  0x8a   :  { %3636 = shalt.err (!%p3633_p12)
}
  0x8b   :  { %120 = dma.hbm_to_vmem [thread:$0]  %s4374_s10, 16, %s118_s18, [#allocation16]  }
  0x8c   :  { %s3645_s20 = scalar_lea.vmem %s142_s2, 16  ;;  %s3649_s6 = scalar_lea.vmem %s142_s2, 32 }
  0x8d   :  { %p3646_p13 = scmp.ne.s32.totalorder %s142_s2, %s3645_s20  ;;  %p3650_p0 = scmp.lt.s32.totalorder %s142_s2, %s142_s2 }
  0x8e   :  { %p3651_p1 = scmp.lt.s32.totalorder %s3649_s6, %s3645_s20 }
  0x90   :  { %p3652_p2 = por %p3651_p1, %p3650_p0 }
  0x92   :  { %p3653_p3 = pnand %p3652_p2, %p3646_p13 }
  0x94   :  { %3656 = shalt.err (!%p3653_p3)
}
  0x95   :  { %144 = dma.hbm_to_vmem [thread:$0]  %s4377_s13, 16, %s142_s2, [#allocation19]  }
  0x96   :  { %s3791_s25 = smov [#allocation23]   ;;  %s3792_s8 = smov [#allocation26]  }
  0x97   :  { %s161_s1 = sshll.u32 %s3791_s25, 4  ;;  %s185_s14 = sshll.u32 %s3792_s8, 4  ;;  %s162_s1 = int_to_ptr.vmem [resolvable:$true] %s161_s1  ;;  %s186_s14 = int_to_ptr.vmem [resolvable:$true] %s185_s14 }
  0x98   :  { %s3665_s4 = scalar_lea.vmem %s162_s1, 16  ;;  %s3669_s10 = scalar_lea.vmem %s162_s1, 32 }
  0x99   :  { %p3666_p4 = scmp.ne.s32.totalorder %s162_s1, %s3665_s4  ;;  %p3670_p5 = scmp.lt.s32.totalorder %s162_s1, %s162_s1 }
  0x9a   :  { %p3671_p6 = scmp.lt.s32.totalorder %s3669_s10, %s3665_s4 }
  0x9c   :  { %p3672_p7 = por %p3671_p6, %p3670_p5 }
  0x9e   :  { %p3673_p8 = pnand %p3672_p7, %p3666_p4 }
  0xa0   :  { %3676 = shalt.err (!%p3673_p8)
}
  0xa1   :  { %164 = dma.hbm_to_vmem [thread:$0]  %s4379_s15, 16, %s162_s1, [#allocation22]  }
  0xa2   :  { %s3685_s18 = scalar_lea.vmem %s186_s14, 16  ;;  %s3689_s13 = scalar_lea.vmem %s186_s14, 32 }
  0xa3   :  { %p3686_p9 = scmp.ne.s32.totalorder %s186_s14, %s3685_s18  ;;  %p3690_p10 = scmp.lt.s32.totalorder %s186_s14, %s186_s14 }
  0xa4   :  { %p3691_p11 = scmp.lt.s32.totalorder %s3689_s13, %s3685_s18 }
  0xa6   :  { %p3692_p12 = por %p3691_p11, %p3690_p10 }
  0xa8   :  { %p3693_p13 = pnand %p3692_p12, %p3686_p9 }
  0xaa   :  { %3696 = shalt.err (!%p3693_p13)
}
  0xab   :  { %188 = dma.hbm_to_vmem [thread:$0]  %s4383_s19, 16, %s186_s14, [#allocation25]  }
  0xac   :  { %s3793_s26 = smov [#allocation29]   ;;  %s3794_s12 = smov [#allocation30]  }
  0xad   :  { %s206_s29 = sshll.u32 %s3793_s26, 4  ;;  %s219_s0 = sshll.u32 %s3794_s12, 4  ;;  %s207_s29 = int_to_ptr.vmem [resolvable:$true] %s206_s29  ;;  %s220_s0 = int_to_ptr.vmem [resolvable:$true] %s219_s0 }
  0xae   :  { %s3705_s20 = scalar_lea.vmem %s207_s29, 512  ;;  %p3710_p1 = scmp.lt.s32.totalorder %s207_s29, %s207_s29 }
  0xaf   :  { %p3706_p0 = scmp.ne.s32.totalorder %s207_s29, %s3705_s20  ;;  %p3711_p2 = scmp.lt.s32.totalorder %s3705_s20, %s3705_s20 }
  0xb1   :  { %p3712_p3 = por %p3711_p2, %p3710_p1 }
  0xb3   :  { %p3713_p4 = pnand %p3712_p3, %p3706_p0 }
  0xb5   :  { %3716 = shalt.err (!%p3713_p4)
}
  0xb6   :  { %212 = dma.hbm_to_vmem [thread:$0]  %s4386_s22, 512, %s207_s29, [#allocation28], %s3781_s28, %s3781_s28, %s3782_s30  }
  0xb7   :  { %s3725_s19 = scalar_lea.vmem %s220_s0, 16  ;;  %s3729_s7 = scalar_lea.vmem %s220_s0, 32 }
  0xb8   :  { %p3726_p5 = scmp.ne.s32.totalorder %s220_s0, %s3725_s19  ;;  %p3730_p6 = scmp.lt.s32.totalorder %s220_s0, %s220_s0 }
  0xb9   :  { %p3731_p7 = scmp.lt.s32.totalorder %s3729_s7, %s3725_s19 }
  0xbb   :  { %p3732_p8 = por %p3731_p7, %p3730_p6 }
  0xbd   :  { %p3733_p9 = pnand %p3732_p8, %p3726_p5 }
  0xbf   :  { %3736 = shalt.err (!%p3733_p9)
}
  0xc0   :  { %222 = dma.hbm_to_vmem [thread:$0]  %s4387_s23, 16, %s220_s0, [#allocation31]  }
  0xc1   :  { %3757 = dma.done.wait [#allocation7], 128  }
  0xc2   :  { %3758 = vsyncadd [#allocation7], 4294967168 }
  0xc3   :  { %3759 = dma.done.wait [#allocation10], 32  }
  0xc4   :  { %3760 = vsyncadd [#allocation10], 4294967264 }
  0xc5   :  { %3761 = dma.done.wait [#allocation13], 32  }
  0xc6   :  { %3762 = vsyncadd [#allocation13], 4294967264 }
  0xc7   :  { %3763 = dma.done.wait [#allocation16], 32  }
  0xc8   :  { %3764 = vsyncadd [#allocation16], 4294967264 }
  0xc9   :  { %3765 = dma.done.wait [#allocation19], 528  }
  0xca   :  { %3766 = vsyncadd [#allocation19], 4294966768 }
  0xcb   :  { %3767 = dma.done.wait [#allocation22], 32  }
  0xcc   :  { %3768 = vsyncadd [#allocation22], 4294967264 }
  0xcd   :  { %3769 = dma.done.wait [#allocation25], 32  }
  0xce   :  { %3770 = vsyncadd [#allocation25], 4294967264 }
  0xcf   :  { %3771 = dma.done.wait [#allocation28], 528  }
  0xd0   :  { %3772 = vsyncadd [#allocation28], 4294966768 }
  0xd1   :  { %3773 = dma.done.wait [#allocation31], 16  }
  0xd2   :  { %3774 = vsyncadd [#allocation31], 4294967280  ;;  %vm4392_vm0 = vcmask 64512   ;;  %vm277_vm1 = vcmask 130048   ;;  %v275_v0 = vld [vmem:[#allocation6] sm:$0xff]  ;;  %s4410_s28 = sld [smem:[#allocation44_spill]]  ;;  %v697_v42 = vlaneseq }
  0xd3   :  { %3183 = vmatprep.subr.mxu0 %v275_v0  ;;  %s4411_s4 = sld [smem:[#allocation43_spill]]  ;;  %v3795_v17 = vmov 0.0   ;;  %vm3796_vm2 = vmmov 0   ;;  %v3048_v20 = vld [vmem:[#allocation9] ss:$0 sm:$0xff]  ;;  %vm468_vm3 = vcmask 261120  }
  0xd4   :  { %3184 = vmatpush3.msra.mxu0 %v275_v0  ;;  %3202 = vmatprep.subr.mxu1 %v3795_v17  ;;  %v466_v29 = vld [vmem:[#allocation12] sm:$0x1]  ;;  %v465_v30 = vld [vmem:[#allocation11] sm:$0x1]  ;;  %s4412_s13 = sld [smem:[#allocation49_spill]]  ;;  %vm702_vm4 = vcmask 122880  }
  0xd5   :  { %3206 = vmatprep.mubr.msk.f32.mxu1 %vm3796_vm2, %v3795_v17  ;;  %v698_v43 = vand.u32 127, %v697_v42  ;;  %s4413_s26 = sld [smem:[#allocation50_spill]] }
  0xd7   :  { %v4044_v44 = vcvt.s32.f32 %v698_v43 }
  0xd8   :  { %v273_v1 = vld [vmem:[%s4410_s28] sm:$0xff]  ;;  %v274_v2 = vld [vmem:[%s4410_s28 + $0x8] sm:$0xff] }
  0xd9   :  { %3185 = vmatprep.mubr.msk.f32.mxu0 %vm4392_vm0, %v273_v1  ;;  %v3987_v3 = vld [vmem:[%s4411_s4 + $0x8] sm:$0xff]  ;;  %v3992_v4 = vld [vmem:[%s4411_s4] sm:$0xff] }
  0xda   :  { %v281_v5 = vsel %vm277_vm1, %v3987_v3, 0.0  ;;  %3186 = vmatmul.mubr.msk.f32.vlgmr.msra.gmra.mxu0 %vm4392_vm0, %v274_v2  ;;  %v278_v6 = vsel %vm277_vm1, %v3992_v4, 0.0  ;;  %v694_v36 = vstv %s4412_s13 }
  0xdb   :  { %282 = vadd.xlane.f32.xlu0 %v281_v5  ;;  %3192 = vmatprep.mubr.msk.f32.mxu0 %vm277_vm1, %v3992_v4 }
  0xdf   :  { %279 = vadd.xlane.f32.xlu0 %v278_v6 }
 0x164   :  { %v283_v7 = vpop.xlane.xlu0 %282 }
 0x165   :  { %v285_v9 = vadd.f32 1.0, %v283_v7 }
 0x167   :  { %3395 = vrsqrt.f32 %v285_v9 }
 0x168   :  { %v280_v8 = vpop.xlane.xlu0 %279 }
 0x169   :  { %v284_v10 = vadd.f32 1.0, %v280_v8 }
 0x16b   :  { %3397 = vrsqrt.f32 %v284_v10 }
 0x174   :  { %v3396_v11 = vpop.eup %3395 }
 0x178   :  { %v3398_v12 = vpop.eup %3397 }
 0x19a   :  { %v3187_v13 = vpop.f32.mrf.mxu0 }
 0x19b   :  { %v371_v14 = vmul.f32 %v3396_v11, %v3187_v13 }
 0x19c   :  { %v361_v15 = vpop.f32.mrf.mxu0 }
 0x19d   :  { %v370_v16 = vmul.f32 %v3398_v12, %v361_v15  ;;  %3188 = vmatprep.subr.mxu0 %v371_v14 }
 0x19e   :  { %3189 = vmatpush3.msra.mxu0 %v371_v14 }
 0x19f   :  { %3190 = vmatprep.subr.mxu0 %v370_v16 }
 0x1a0   :  { %3191 = vmatpush3.msra.mxu0 %v370_v16 }
 0x1a1   :  { %3193 = vmatmul.mubr.msk.f32.vlgmr.msra.gmra.mxu0 %vm277_vm1, %v3987_v3  ;;  %3195 = vmatprep.subr.mxu0 %v3795_v17 }
 0x1a2   :  { %3199 = vmatprep.mubr.msk.f32.mxu0 %vm3796_vm2, %v3795_v17 }
 0x261   :  { %v3194_v18 = vpop.f32.mrf.mxu0 }
 0x262   :  { %v450_v19 = vadd.f32 %v3194_v18, %v371_v14 }
 0x263   :  { %v444_v21 = vpop.f32.mrf.mxu0 }
 0x264   :  { %v454_v22 = vmul.f32 %v3396_v11, %v450_v19  ;;  %v445_v23 = vadd.f32 %v444_v21, %v370_v16 }
 0x266   :  { %v462_v24 = vadd.f32 %v3048_v20, %v454_v22  ;;  %v453_v25 = vmul.f32 %v3398_v12, %v445_v23 }
 0x268   :  { %v464_v26 = vmax.f32 %v462_v24, 0.0  ;;  %v461_v27 = vadd.f32 %v3048_v20, %v453_v25 }
 0x26a   :  { %3196 = vmatpush3.xpose.msk.msra.mxu0 %vm468_vm3, %v464_v26  ;;  %3203 = vmatpush3.xpose.msk.msra.mxu1 %vm468_vm3, %v464_v26  ;;  %v463_v28 = vmax.f32 %v461_v27, 0.0  ;;  %v4085_v27 = vshrl.u32 %v697_v42, 7 }
 0x26b   :  { %3197 = vmatprep.subr.mxu0 %v3795_v17  ;;  %3204 = vmatprep.subr.mxu1 %v3795_v17 }
 0x26e   :  { %3198 = vmatpush3.xpose.msk.msra.mxu0 %vm468_vm3, %v463_v28  ;;  %3205 = vmatpush3.xpose.msk.msra.mxu1 %vm468_vm3, %v463_v28 }
 0x26f   :  { %3216 = vmatprep.subr.mxu1 %v3795_v17  ;;  %3209 = vmatprep.subr.mxu0 %v3795_v17 }
 0x271   :  { %3200 = vmatmul.mubr.msk.f32.vlgmr.msra.gmra.mxu0 %vm468_vm3, %v466_v29  ;;  %3207 = vmatmul.mubr.msk.f32.vlgmr.msra.gmra.mxu1 %vm468_vm3, %v465_v30 }
 0x272   :  { %3217 = vmatpush3.msra.mxu1 %v464_v26  ;;  %3210 = vmatpush3.msra.mxu0 %v3987_v3 }
 0x273   :  { %3218 = vmatprep.subr.mxu1 %v3795_v17  ;;  %3211 = vmatprep.subr.mxu0 %v3795_v17 }
 0x274   :  { %3219 = vmatpush3.msra.mxu1 %v463_v28  ;;  %3212 = vmatpush3.msra.mxu0 %v3992_v4  ;;  %v4088_v28 = vsub.s32 0, %v4085_v27 }
 0x275   :  { %3213 = vmatprep.mubr.msk.f32.mxu0 %vm3796_vm2, %v3795_v17  ;;  %3223 = vmatprep.subr.mxu0 %v3795_v17 }
 0x276   :  { %3220 = vmatprep.mubr.msk.f32.mxu1 %vm3796_vm2, %v3795_v17  ;;  %3230 = vmatprep.subr.mxu1 %v3795_v17 }
 0x331   :  { %v544_v31 = vpop.f32.mrf.mxu0  ;;  %v617_v32 = vpop.f32.mrf.mxu1 }
 0x332   :  { %3214 = vmatmul.mubr.msk.f32.vlgmr.msra.gmra.mxu0 %vm277_vm1, %v544_v31 }
 0x333   :  { %v3201_v33 = vpop.f32.mrf.mxu0  ;;  %v3208_v34 = vpop.f32.mrf.mxu1  ;;  %3224 = vmatpush3.msra.mxu0 %v3987_v3  ;;  %3227 = vmatprep.mubr.msk.f32.mxu0 %vm3796_vm2, %v3795_v17 }
 0x334   :  { %3225 = vmatprep.subr.mxu0 %v3795_v17 }
 0x335   :  { %3226 = vmatpush3.msra.mxu0 %v3992_v4 }
 0x336   :  { %3235 = vmatprep.subr.mxu0 %v3795_v17 }
 0x3f2   :  { %v690_v35 = vpop.f32.mrf.mxu0 }
 0x3f3   :  { %v691_v37 = vadd.f32 %v690_v35, %v617_v32 }
 0x3f4   :  { %v3215_v38 = vpop.f32.mrf.mxu0 }
 0x3f5   :  { %v695_v39 = vadd.f32 %v694_v36, %v691_v37 }
 0x3f7   :  { %3399 = vtanh.f32 %v695_v39 }
 0x404   :  { %v4039_v40 = vpop.eup %3399 }
 0x405   :  { %v703_v41 = vsel %vm702_vm4, %v4039_v40, -inf }
 0x406   :  { %704 = vmax.xlane.f32.xlu1 %v703_v41 }
 0x48f   :  { %v705_v45 = vpop.xlane.xlu1 %704 }
 0x490   :  { %vm706_vm5 = vcmp.eq.f32.partialorder %v4039_v40, %v705_v45 }
 0x491   :  { %v707_v46 = vsel %vm706_vm5, %v4044_v44, 16.0 }
 0x492   :  { %v708_v47 = vsel %vm702_vm4, %v707_v46, inf }
 0x493   :  { %709 = vmin.xlane.f32.xlu1 %v708_v47 }
 0x51c   :  { %v4049_v48 = vpop.xlane.xlu1 %709 }
 0x51d   :  { %vm720_vm6 = vcmp.eq.f32.partialorder %v4044_v44, %v4049_v48  ;;  %v715_v30 = vrot.slane %v4049_v48, %v4088_v28 }
 0x51e   :  { %v721_v49 = vsel %vm720_vm6, -2.0, %v4039_v40 }
 0x51f   :  { %v722_v50 = vsel %vm702_vm4, %v721_v49, -inf }
 0x520   :  { %723 = vmax.xlane.f32.xlu0 %v722_v50 }
 0x5a9   :  { %v724_v51 = vpop.xlane.xlu0 %723 }
 0x5aa   :  { %vm725_vm7 = vcmp.eq.f32.partialorder %v721_v49, %v724_v51 }
 0x5ab   :  { %v726_v52 = vsel %vm725_vm7, %v4044_v44, 16.0 }
 0x5ac   :  { %v727_v53 = vsel %vm702_vm4, %v726_v52, inf }
 0x5ad   :  { %728 = vmin.xlane.f32.xlu1 %v727_v53 }
 0x636   :  { %v4057_v54 = vpop.xlane.xlu1 %728 }
 0x637   :  { %vm739_vm8 = vcmp.eq.f32.partialorder %v4044_v44, %v4057_v54  ;;  %v734_v29 = vrot.slane %v4057_v54, %v4088_v28 }
 0x638   :  { %v740_v55 = vsel %vm739_vm8, -2.0, %v721_v49 }
 0x639   :  { %v741_v56 = vsel %vm702_vm4, %v740_v55, -inf }
 0x63a   :  { %742 = vmax.xlane.f32.xlu0 %v741_v56 }
 0x6c3   :  { %v743_v57 = vpop.xlane.xlu0 %742 }
 0x6c4   :  { %vm744_vm9 = vcmp.eq.f32.partialorder %v740_v55, %v743_v57 }
 0x6c5   :  { %v745_v58 = vsel %vm744_vm9, %v4044_v44, 16.0  ;;  %vm4395_vm9 = vcmp.eq.s32.totalorder %v4085_v27, 1 }
 0x6c6   :  { %v746_v59 = vsel %vm702_vm4, %v745_v58, inf  ;;  %v1080_v58 = vld [vmem:[%s4413_s26 + $0x10] sm:$0xff] }
 0x6c7   :  { %747 = vmin.xlane.f32.xlu1 %v746_v59  ;;  %v1079_v59 = vld [vmem:[%s4413_s26 + $0x8] sm:$0xff] }
 0x750   :  { %v748_v60 = vpop.xlane.xlu1 %747 }
 0x751   :  { %vm758_vm10 = vcmp.eq.f32.partialorder %v4044_v44, %v748_v60  ;;  %v753_v31 = vrot.slane %v748_v60, %v4088_v28  ;;  %v1078_v60 = vld [vmem:[%s4413_s26] sm:$0xff] }
 0x752   :  { %v759_v61 = vsel %vm758_vm10, -2.0, %v740_v55  ;;  %vm735_vm10 = vcmp.eq.f32.partialorder %v4044_v44, %v734_v29  ;;  %v856_v55 = vrot.slane %v4039_v40, %v4088_v28  ;;  %v1081_v40 = vld [vmem:[%s4413_s26 + $0x18] sm:$0xff]  ;;  %v1469_v29 = vstv %s4375_s11 }
 0x753   :  { %v760_v62 = vsel %vm702_vm4, %v759_v61, -inf }
 0x754   :  { %761 = vmax.xlane.f32.xlu0 %v760_v62 }
 0x7dd   :  { %v762_v63 = vpop.xlane.xlu0 %761 }
 0x7de   :  { %vm763_vm11 = vcmp.eq.f32.partialorder %v759_v61, %v762_v63 }
 0x7df   :  { %v764_v0 = vsel %vm763_vm11, %v4044_v44, 16.0  ;;  %vm716_vm11 = vcmp.eq.f32.partialorder %v4044_v44, %v715_v30 }
 0x7e0   :  { %v765_v1 = vsel %vm702_vm4, %v764_v0, inf }
 0x7e1   :  { %766 = vmin.xlane.f32.xlu1 %v765_v1 }
 0x86a   :  { %v767_v2 = vpop.xlane.xlu1 %766 }
 0x86b   :  { %vm777_vm12 = vcmp.eq.f32.partialorder %v4044_v44, %v767_v2  ;;  %v772_v32 = vrot.slane %v767_v2, %v4088_v28 }
 0x86c   :  { %v778_v3 = vsel %vm777_vm12, -2.0, %v759_v61  ;;  %vm4394_vm12 = vcmp.eq.s32.totalorder %v4085_v27, 2 }
 0x86d   :  { %v779_v4 = vsel %vm702_vm4, %v778_v3, -inf }
 0x86e   :  { %780 = vmax.xlane.f32.xlu0 %v779_v4 }
 0x8f7   :  { %v781_v5 = vpop.xlane.xlu0 %780 }
 0x8f8   :  { %vm782_vm13 = vcmp.eq.f32.partialorder %v778_v3, %v781_v5 }
 0x8f9   :  { %v783_v6 = vsel %vm782_vm13, %v4044_v44, 16.0  ;;  %vm754_vm13 = vcmp.eq.f32.partialorder %v4044_v44, %v753_v31 }
 0x8fa   :  { %v784_v7 = vsel %vm702_vm4, %v783_v6, inf }
 0x8fb   :  { %785 = vmin.xlane.f32.xlu1 %v784_v7 }
 0x984   :  { %v786_v8 = vpop.xlane.xlu1 %785 }
 0x985   :  { %vm796_vm14 = vcmp.eq.f32.partialorder %v4044_v44, %v786_v8  ;;  %v791_v33 = vrot.slane %v786_v8, %v4088_v28 }
 0x986   :  { %v797_v9 = vsel %vm796_vm14, -2.0, %v778_v3  ;;  %vm736_vm14 = vmand %vm4395_vm9, %vm735_vm10 }
 0x987   :  { %v798_v10 = vsel %vm702_vm4, %v797_v9, -inf  ;;  %v737_v35 = vsel %vm736_vm14, 1.0, %v3795_v17  ;;  %vm792_vm0 = vcmp.eq.f32.partialorder %v4044_v44, %v791_v33  ;;  %vm825_vm14 = vcmp.eq.s32.totalorder %v4085_v27, 6 }
 0x988   :  { %799 = vmax.xlane.f32.xlu0 %v798_v10 }
 0xa11   :  { %v800_v11 = vpop.xlane.xlu0 %799 }
 0xa12   :  { %vm801_vm15 = vcmp.eq.f32.partialorder %v797_v9, %v800_v11 }
 0xa13   :  { %v802_v12 = vsel %vm801_vm15, %v4044_v44, 16.0 }
 0xa14   :  { %v803_v13 = vsel %vm702_vm4, %v802_v12, inf }
 0xa15   :  { %804 = vmin.xlane.f32.xlu1 %v803_v13 }
 0xa9e   :  { %v805_v14 = vpop.xlane.xlu1 %804 }
 0xa9f   :  { %vm815_vm5 = vcmp.eq.f32.partialorder %v4044_v44, %v805_v14  ;;  %v810_v34 = vrot.slane %v805_v14, %v4088_v28  ;;  %v3062_v14 = vld [vmem:[#allocation14] ss:$0 sm:$0xff] }
 0xaa0   :  { %v816_v15 = vsel %vm815_vm5, -2.0, %v797_v9  ;;  %vm768_vm5 = vcmp.eq.s32.totalorder %v4085_v27, 3 }
 0xaa1   :  { %v817_v16 = vsel %vm702_vm4, %v816_v15, -inf }
 0xaa2   :  { %818 = vmax.xlane.f32.xlu0 %v817_v16 }
 0xb2b   :  { %v819_v18 = vpop.xlane.xlu0 %818 }
 0xb2c   :  { %vm820_vm6 = vcmp.eq.f32.partialorder %v816_v15, %v819_v18 }
 0xb2d   :  { %v821_v19 = vsel %vm820_vm6, %v4044_v44, 16.0  ;;  %vm773_vm6 = vcmp.eq.f32.partialorder %v4044_v44, %v772_v32 }
 0xb2e   :  { %v822_v20 = vsel %vm702_vm4, %v821_v19, inf  ;;  %vm774_vm10 = vmand %vm768_vm5, %vm773_vm6 }
 0xb2f   :  { %823 = vmin.xlane.f32.xlu1 %v822_v20  ;;  %v775_v41 = vsel %vm774_vm10, 1.0, %v3795_v17  ;;  %v1245_v20 = vld [vmem:[#allocation17] sm:$0x1] }
 0xbb8   :  { %v824_v21 = vpop.xlane.xlu1 %823 }
 0xbb9   :  { %vm834_vm7 = vcmp.eq.f32.partialorder %v4044_v44, %v824_v21  ;;  %v829_v36 = vrot.slane %v824_v21, %v4088_v28  ;;  %v1244_v21 = vld [vmem:[#allocation15] sm:$0x1] }
 0xbba   :  { %v835_v22 = vsel %vm834_vm7, -2.0, %v816_v15  ;;  %vm755_vm7 = vmand %vm4394_vm12, %vm754_vm13 }
 0xbbb   :  { %v836_v23 = vsel %vm702_vm4, %v835_v22, -inf  ;;  %v756_v38 = vsel %vm755_vm7, 1.0, %v3795_v17  ;;  %vm830_vm12 = vcmp.eq.f32.partialorder %v4044_v44, %v829_v36 }
 0xbbc   :  { %837 = vmax.xlane.f32.xlu0 %v836_v23 }
 0xc45   :  { %v838_v24 = vpop.xlane.xlu0 %837 }
 0xc46   :  { %vm839_vm8 = vcmp.eq.f32.partialorder %v835_v22, %v838_v24 }
 0xc47   :  { %v840_v25 = vsel %vm839_vm8, %v4044_v44, 16.0  ;;  %vm787_vm8 = vcmp.eq.s32.totalorder %v4085_v27, 4 }
 0xc48   :  { %v841_v26 = vsel %vm702_vm4, %v840_v25, inf  ;;  %vm4393_vm4 = vcmp.eq.s32.totalorder %v4085_v27, 0  ;;  %vm793_vm13 = vmand %vm787_vm8, %vm792_vm0  ;;  %vm844_vm0 = vcmp.eq.s32.totalorder %v4085_v27, 7 }
 0xc49   :  { %842 = vmin.xlane.f32.xlu1 %v841_v26  ;;  %vm717_vm15 = vmand %vm4393_vm4, %vm716_vm11  ;;  %vm806_vm11 = vcmp.eq.s32.totalorder %v4085_v27, 5  ;;  %vm811_vm4 = vcmp.eq.f32.partialorder %v4044_v44, %v810_v34  ;;  %v794_v43 = vsel %vm793_vm13, 1.0, %v3795_v17 }
 0xc4a   :  { %v718_v37 = vsel %vm717_vm15, 1.0, %v3795_v17  ;;  %vm812_vm9 = vmand %vm806_vm11, %vm811_vm4 }
 0xc4b   :  { %v738_v39 = vadd.f32 %v737_v35, %v718_v37  ;;  %vm831_vm15 = vmand %vm825_vm14, %vm830_vm12  ;;  %v813_v46 = vsel %vm812_vm9, 1.0, %v3795_v17  ;;  %vm4414_vm9 = vcmask 64512   ;;  %vm1472_vm12 = vcmask 57344  }
 0xc4c   :  { %v832_v49 = vsel %vm831_vm15, 1.0, %v3795_v17 }
 0xc4d   :  { %v757_v42 = vadd.f32 %v756_v38, %v738_v39 }
 0xc4f   :  { %v776_v45 = vadd.f32 %v775_v41, %v757_v42 }
 0xc51   :  { %v795_v47 = vadd.f32 %v794_v43, %v776_v45 }
 0xc53   :  { %v814_v51 = vadd.f32 %v813_v46, %v795_v47 }
 0xc55   :  { %v833_v52 = vadd.f32 %v832_v49, %v814_v51 }
 0xcd2   :  { %v843_v48 = vpop.xlane.xlu1 %842 }
 0xcd3   :  { %v848_v50 = vrot.slane %v843_v48, %v4088_v28 }
 0xcd5   :  { %vm849_vm6 = vcmp.eq.f32.partialorder %v4044_v44, %v848_v50 }
 0xcd6   :  { %vm850_vm7 = vmand %vm844_vm0, %vm849_vm6 }
 0xcd7   :  { %v851_v53 = vsel %vm850_vm7, 1.0, %v3795_v17 }
 0xcd8   :  { %v852_v54 = vadd.f32 %v851_v53, %v833_v52 }
 0xcda   :  { %3221 = vmatmul.mubr.msk.f32.vlgmr.msra.gmra.mxu1 %vm277_vm1, %v852_v54  ;;  %3228 = vmatmul.mubr.msk.f32.vlgmr.msra.gmra.mxu0 %vm277_vm1, %v852_v54  ;;  %v857_v56 = vmul.f32 %v856_v55, %v852_v54 }
 0xcdb   :  { %3231 = vmatpush3.xpose.msk.msra.mxu1 %vm277_vm1, %v852_v54  ;;  %3232 = vmatprep.mubr.msk.f32.mxu1 %vm3796_vm2, %v3795_v17 }
 0xcdc   :  { %v858_v57 = vsel %vm277_vm1, %v857_v56, 0.0  ;;  %3243 = vmatprep.mubr.msk.f32.mxu0 %vm3796_vm2, %v3795_v17  ;;  %3246 = vmatprep.subr.mxu1 %v3795_v17 }
 0xcdd   :  { %859 = vadd.xlane.f32.xlu0 %v858_v57  ;;  %3236 = vmatpush3.msra.mxu0 %v1081_v40 }
 0xcde   :  { %3237 = vmatprep.subr.mxu0 %v3795_v17 }
 0xcdf   :  { %3238 = vmatpush3.msra.mxu0 %v1080_v58 }
 0xce0   :  { %3239 = vmatprep.subr.mxu0 %v3795_v17 }
 0xce1   :  { %3240 = vmatpush3.msra.mxu0 %v1079_v59 }
 0xce2   :  { %3241 = vmatprep.subr.mxu0 %v3795_v17 }
 0xce3   :  { %3242 = vmatpush3.msra.mxu0 %v1078_v60 }
 0xce4   :  { %3256 = vmatprep.subr.mxu0 %v3795_v17 }
 0xd66   :  { %v860_v61 = vpop.xlane.xlu0 %859 }
 0xd9a   :  { %v930_v62 = vpop.f32.mrf.mxu1  ;;  %v1001_v63 = vpop.f32.mrf.mxu0 }
 0xd9b   :  { %v934_v0 = vmul.f32 %v930_v62, %v860_v61  ;;  %3233 = vmatmul.mubr.msk.f32.vlgmr.msra.gmra.mxu1 %vm277_vm1, %v1001_v63  ;;  %vm4415_vm1 = vmmov %vm4414_vm9 }
 0xd9c   :  { %v3222_v1 = vpop.f32.mrf.mxu1  ;;  %v3229_v2 = vpop.f32.mrf.mxu0  ;;  %3248 = vmatprep.mubr.msk.f32.mxu1 %vm3796_vm2, %v3795_v17  ;;  %vm4416_vm4 = vmmov %vm4415_vm1 }
 0xd9d   :  { %3244 = vmatmul.mubr.msk.f32.vlgmr.msra.gmra.mxu0 %vm468_vm3, %v934_v0 }
 0xd9e   :  { %3258 = vmatprep.mubr.msk.f32.mxu0 %vm3796_vm2, %v3795_v17 }
 0xe5b   :  { %v1074_v3 = vpop.f32.mrf.mxu1 }
 0xe5c   :  { %v1083_v4 = vsel %vm4414_vm9, %v1074_v3, 0.0 }
 0xe5d   :  { %1084 = vadd.xlane.f32.xlu1 %v1083_v4  ;;  %v3234_v5 = vpop.f32.mrf.mxu1  ;;  %v1157_v6 = vpop.f32.mrf.mxu0 }
 0xe5f   :  { %v3245_v7 = vpop.f32.mrf.mxu0 }
 0xee6   :  { %v1085_v8 = vpop.xlane.xlu1 %1084 }
 0xee7   :  { %v1086_v9 = vadd.f32 1.0, %v1085_v8  ;;  %v1772_v8 = vld [vmem:[#allocation18 + $0x18] sm:$0xff] }
 0xee9   :  { %3401 = vrsqrt.f32 %v1086_v9  ;;  %v1771_v9 = vld [vmem:[#allocation18 + $0x10] sm:$0xff] }
 0xef6   :  { %v3402_v10 = vpop.eup %3401 }
 0xef7   :  { %v1161_v11 = vmul.f32 %v3402_v10, %v1157_v6 }
 0xef9   :  { %3247 = vmatpush3.msra.mxu1 %v1161_v11 }
 0xefa   :  { %3249 = vmatmul.mubr.msk.f32.vlgmr.msra.gmra.mxu1 %vm4415_vm1, %v1074_v3  ;;  %3251 = vmatprep.subr.mxu1 %v3795_v17  ;;  %vm4417_vm1 = vcmp.eq.s32.totalorder %v4085_v27, 1 }
 0xefb   :  { %3253 = vmatprep.mubr.msk.f32.mxu1 %vm3796_vm2, %v3795_v17 }
 0xfba   :  { %v1231_v12 = vpop.f32.mrf.mxu1 }
 0xfbb   :  { %v1232_v13 = vadd.f32 %v1231_v12, %v1161_v11  ;;  %v1769_v11 = vld [vmem:[#allocation18] sm:$0xff] }
 0xfbc   :  { %v3250_v15 = vpop.f32.mrf.mxu1 }
 0xfbd   :  { %v1235_v16 = vmul.f32 %v3402_v10, %v1232_v13  ;;  %v1770_v10 = vld [vmem:[#allocation18 + $0x8] sm:$0xff] }
 0xfbf   :  { %v1242_v18 = vadd.f32 %v3062_v14, %v1235_v16 }
 0xfc1   :  { %v1243_v19 = vmax.f32 %v1242_v18, 0.0 }
 0xfc3   :  { %3252 = vmatpush3.xpose.msk.msra.mxu1 %vm468_vm3, %v1243_v19  ;;  %3257 = vmatpush3.xpose.msk.msra.mxu0 %vm468_vm3, %v1243_v19 }
 0xfc4   :  { %3261 = vmatprep.subr.mxu1 %v3795_v17  ;;  %3266 = vmatprep.subr.mxu0 %v3795_v17 }
 0xfc6   :  { %3254 = vmatmul.mubr.msk.f32.vlgmr.msra.gmra.mxu1 %vm468_vm3, %v1245_v20  ;;  %3259 = vmatmul.mubr.msk.f32.vlgmr.msra.gmra.mxu0 %vm468_vm3, %v1244_v21 }
 0xfc7   :  { %3262 = vmatpush3.msra.mxu1 %v1074_v3  ;;  %3267 = vmatpush3.msra.mxu0 %v1243_v19 }
 0xfc8   :  { %3263 = vmatprep.mubr.msk.f32.mxu1 %vm3796_vm2, %v3795_v17  ;;  %3271 = vmatprep.subr.mxu1 %v3795_v17 }
 0xfc9   :  { %3268 = vmatprep.mubr.msk.f32.mxu0 %vm3796_vm2, %v3795_v17  ;;  %3276 = vmatprep.subr.mxu0 %v3795_v17 }
0x1086   :  { %v1319_v22 = vpop.f32.mrf.mxu1  ;;  %v1392_v23 = vpop.f32.mrf.mxu0 }
0x1087   :  { %3264 = vmatmul.mubr.msk.f32.vlgmr.msra.gmra.mxu1 %vm4416_vm4, %v1319_v22 }
0x1088   :  { %3272 = vmatpush3.msra.mxu1 %v1074_v3  ;;  %v3255_v24 = vpop.f32.mrf.mxu1  ;;  %v3260_v25 = vpop.f32.mrf.mxu0  ;;  %3273 = vmatprep.mubr.msk.f32.mxu1 %vm3796_vm2, %v3795_v17 }
0x1089   :  { %3281 = vmatprep.subr.mxu1 %v3795_v17 }
0x1147   :  { %v1465_v26 = vpop.f32.mrf.mxu1 }
0x1148   :  { %v1466_v30 = vadd.f32 %v1465_v26, %v1392_v23 }
0x1149   :  { %v3265_v31 = vpop.f32.mrf.mxu1 }
0x114a   :  { %v1470_v32 = vadd.f32 %v1469_v29, %v1466_v30 }
0x114c   :  { %3403 = vtanh.f32 %v1470_v32  ;;  %v3075_v32 = vld [vmem:[#allocation20] ss:$0 sm:$0xff] }
0x1159   :  { %v4189_v33 = vpop.eup %3403 }
0x115a   :  { %v1473_v34 = vsel %vm1472_vm12, %v4189_v33, -inf  ;;  %v1546_v5 = vrot.slane %v4189_v33, %v4088_v28 }
0x115b   :  { %1474 = vmax.xlane.f32.xlu0 %v1473_v34 }
0x11e4   :  { %v1475_v35 = vpop.xlane.xlu0 %1474 }
0x11e5   :  { %vm1476_vm8 = vcmp.eq.f32.partialorder %v4189_v33, %v1475_v35 }
0x11e6   :  { %v1477_v36 = vsel %vm1476_vm8, %v4044_v44, 8.0  ;;  %vm4418_vm8 = vcmp.eq.s32.totalorder %v4085_v27, 0 }
0x11e7   :  { %v1478_v37 = vsel %vm1472_vm12, %v1477_v36, inf }
0x11e8   :  { %1479 = vmin.xlane.f32.xlu1 %v1478_v37  ;;  %v1942_v37 = vld [vmem:[#allocation23] sm:$0x1] }
0x1271   :  { %v1480_v38 = vpop.xlane.xlu1 %1479 }
0x1272   :  { %vm1489_vm10 = vcmp.eq.f32.partialorder %v4044_v44, %v1480_v38  ;;  %v1484_v58 = vrot.slane %v1480_v38, %v4088_v28  ;;  %v1941_v38 = vld [vmem:[#allocation21] sm:$0x1] }
0x1273   :  { %v1490_v39 = vsel %vm1489_vm10, -2.0, %v4189_v33 }
0x1274   :  { %v1491_v41 = vsel %vm1472_vm12, %v1490_v39, -inf  ;;  %vm1485_vm7 = vcmp.eq.f32.partialorder %v4044_v44, %v1484_v58 }
0x1275   :  { %1492 = vmax.xlane.f32.xlu0 %v1491_v41  ;;  %vm1486_vm10 = vmand %vm4418_vm8, %vm1485_vm7  ;;  %vm2171_vm8 = vcmask 24576  }
0x1276   :  { %v1487_v62 = vsel %vm1486_vm10, 1.0, %v3795_v17 }
0x12fe   :  { %v1493_v42 = vpop.xlane.xlu0 %1492 }
0x12ff   :  { %vm1494_vm11 = vcmp.eq.f32.partialorder %v1490_v39, %v1493_v42 }
0x1300   :  { %v1495_v43 = vsel %vm1494_vm11, %v4044_v44, 8.0 }
0x1301   :  { %v1496_v45 = vsel %vm1472_vm12, %v1495_v43, inf }
0x1302   :  { %1497 = vmin.xlane.f32.xlu1 %v1496_v45 }
0x138b   :  { %v1498_v46 = vpop.xlane.xlu1 %1497 }
0x138c   :  { %vm1507_vm13 = vcmp.eq.f32.partialorder %v4044_v44, %v1498_v46  ;;  %v1502_v40 = vrot.slane %v1498_v46, %v4088_v28  ;;  %v2168_v46 = vstv %s4380_s16 }
0x138d   :  { %v1508_v47 = vsel %vm1507_vm13, -2.0, %v1490_v39 }
0x138e   :  { %v1509_v48 = vsel %vm1472_vm12, %v1508_v47, -inf  ;;  %vm1503_vm6 = vcmp.eq.f32.partialorder %v4044_v44, %v1502_v40 }
0x138f   :  { %1510 = vmax.xlane.f32.xlu0 %v1509_v48  ;;  %vm1504_vm4 = vmand %vm4417_vm1, %vm1503_vm6  ;;  %vm1858_vm1 = vcmask 1043456  }
0x1390   :  { %v1505_v60 = vsel %vm1504_vm4, 1.0, %v3795_v17  ;;  %vm1854_vm4 = vcmask 31744  }
0x1391   :  { %v1506_v1 = vadd.f32 %v1505_v60, %v1487_v62 }
0x1418   :  { %v1511_v49 = vpop.xlane.xlu0 %1510 }
0x1419   :  { %vm1512_vm14 = vcmp.eq.f32.partialorder %v1508_v47, %v1511_v49 }
0x141a   :  { %v1513_v50 = vsel %vm1512_vm14, %v4044_v44, 8.0 }
0x141b   :  { %v1514_v51 = vsel %vm1472_vm12, %v1513_v50, inf }
0x141c   :  { %1515 = vmin.xlane.f32.xlu1 %v1514_v51 }
0x14a5   :  { %v1516_v52 = vpop.xlane.xlu1 %1515 }
0x14a6   :  { %vm1525_vm15 = vcmp.eq.f32.partialorder %v4044_v44, %v1516_v52  ;;  %v1520_v59 = vrot.slane %v1516_v52, %v4088_v28 }
0x14a7   :  { %v1526_v53 = vsel %vm1525_vm15, -2.0, %v1508_v47  ;;  %vm1548_vm15 = vcmask 60416  }
0x14a8   :  { %v1527_v54 = vsel %vm1472_vm12, %v1526_v53, -inf  ;;  %vm1521_vm9 = vcmp.eq.f32.partialorder %v4044_v44, %v1520_v59 }
0x14a9   :  { %1528 = vmax.xlane.f32.xlu0 %v1527_v54 }
0x1532   :  { %v1529_v55 = vpop.xlane.xlu0 %1528 }
0x1533   :  { %vm1530_vm0 = vcmp.eq.f32.partialorder %v1526_v53, %v1529_v55 }
0x1534   :  { %v1531_v56 = vsel %vm1530_vm0, %v4044_v44, 8.0  ;;  %vm4420_vm0 = vcmask 64512  }
0x1535   :  { %v1532_v57 = vsel %vm1472_vm12, %v1531_v56, inf  ;;  %vm4419_vm12 = vcmp.eq.s32.totalorder %v4085_v27, 2  ;;  %vm4421_vm6 = vmmov %vm4420_vm0 }
0x1536   :  { %1533 = vmin.xlane.f32.xlu1 %v1532_v57  ;;  %vm1522_vm11 = vmand %vm4419_vm12, %vm1521_vm9  ;;  %vm1774_vm9 = vcmask 27648  }
0x1537   :  { %v1523_v63 = vsel %vm1522_vm11, 1.0, %v3795_v17  ;;  %vm4422_vm7 = vmmov %vm4420_vm0 }
0x1538   :  { %v1524_v2 = vadd.f32 %v1523_v63, %v1506_v1 }
0x15bf   :  { %v1534_v61 = vpop.xlane.xlu1 %1533 }
0x15c0   :  { %v1538_v0 = vrot.slane %v1534_v61, %v4088_v28 }
0x15c2   :  { %vm1539_vm13 = vcmp.eq.f32.partialorder %v4044_v44, %v1538_v0 }
0x15c3   :  { %vm1540_vm14 = vmand %vm768_vm5, %vm1539_vm13 }
0x15c4   :  { %v1541_v3 = vsel %vm1540_vm14, 1.0, %v3795_v17  ;;  %vm4423_vm5 = vmmov %vm4420_vm0  ;;  %vm4424_vm14 = vcmp.eq.s32.totalorder %v4085_v27, 0 }
0x15c5   :  { %v1542_v4 = vadd.f32 %v1541_v3, %v1524_v2 }
0x15c7   :  { %3269 = vmatmul.mubr.msk.f32.vlgmr.msra.gmra.mxu0 %vm4420_vm0, %v1542_v4  ;;  %3274 = vmatmul.mubr.msk.f32.vlgmr.msra.gmra.mxu1 %vm4421_vm6, %v1542_v4  ;;  %v1547_v6 = vmul.f32 %v1546_v5, %v1542_v4  ;;  %vm4425_vm6 = vcmp.eq.s32.totalorder %v4085_v27, 1  ;;  %v2436_v5 = vld [vmem:[%s4381_s17 + $0x10] sm:$0xff] }
0x15c8   :  { %3277 = vmatpush3.xpose.msk.msra.mxu0 %vm4422_vm7, %v1542_v4  ;;  %3278 = vmatprep.mubr.msk.f32.mxu0 %vm3796_vm2, %v3795_v17 }
0x15c9   :  { %v1549_v7 = vsel %vm1548_vm15, %v1547_v6, 0.0  ;;  %3289 = vmatprep.mubr.msk.f32.mxu1 %vm3796_vm2, %v3795_v17  ;;  %3292 = vmatprep.subr.mxu0 %v3795_v17  ;;  %v2435_v6 = vld [vmem:[%s4381_s17 + $0x8] sm:$0xff] }
0x15ca   :  { %1550 = vadd.xlane.f32.xlu0 %v1549_v7  ;;  %3282 = vmatpush3.msra.mxu1 %v1772_v8  ;;  %v2434_v7 = vld [vmem:[%s4381_s17] sm:$0xff] }
0x15cb   :  { %3283 = vmatprep.subr.mxu1 %v3795_v17 }
0x15cc   :  { %3284 = vmatpush3.msra.mxu1 %v1771_v9 }
0x15cd   :  { %3285 = vmatprep.subr.mxu1 %v3795_v17 }
0x15ce   :  { %3286 = vmatpush3.msra.mxu1 %v1770_v10 }
0x15cf   :  { %3287 = vmatprep.subr.mxu1 %v3795_v17 }
0x15d0   :  { %3288 = vmatpush3.msra.mxu1 %v1769_v11 }
0x15d1   :  { %3302 = vmatprep.subr.mxu1 %v3795_v17 }
0x1653   :  { %v1551_v12 = vpop.xlane.xlu0 %1550 }
0x1687   :  { %v1621_v13 = vpop.f32.mrf.mxu0  ;;  %v1692_v14 = vpop.f32.mrf.mxu1 }
0x1688   :  { %v1625_v15 = vmul.f32 %v1621_v13, %v1551_v12  ;;  %3279 = vmatmul.mubr.msk.f32.vlgmr.msra.gmra.mxu0 %vm4423_vm5, %v1692_v14  ;;  %vm2211_vm5 = vcmask 25600  }
0x1689   :  { %v3270_v16 = vpop.f32.mrf.mxu0  ;;  %v3275_v18 = vpop.f32.mrf.mxu1  ;;  %3294 = vmatprep.mubr.msk.f32.mxu0 %vm3796_vm2, %v3795_v17 }
0x168a   :  { %3290 = vmatmul.mubr.msk.f32.vlgmr.msra.gmra.mxu1 %vm468_vm3, %v1625_v15 }
0x168b   :  { %3304 = vmatprep.mubr.msk.f32.mxu1 %vm3796_vm2, %v3795_v17 }
0x1748   :  { %v1765_v19 = vpop.f32.mrf.mxu0 }
0x1749   :  { %v1775_v20 = vsel %vm1774_vm9, %v1765_v19, 0.0  ;;  %vm2439_vm9 = vcmask 9216  }
0x174a   :  { %v1849_v21 = vpop.f32.mrf.mxu1  ;;  %1776 = vadd.xlane.f32.xlu1 %v1775_v20  ;;  %v3280_v22 = vpop.f32.mrf.mxu0 }
0x174c   :  { %v3291_v23 = vpop.f32.mrf.mxu1 }
0x17d3   :  { %v1777_v24 = vpop.xlane.xlu1 %1776 }
0x17d4   :  { %v1778_v25 = vadd.f32 1.0, %v1777_v24 }
0x17d6   :  { %3405 = vrsqrt.f32 %v1778_v25 }
0x17e3   :  { %v3406_v26 = vpop.eup %3405 }
0x17e4   :  { %v1853_v29 = vmul.f32 %v3406_v26, %v1849_v21 }
0x17e6   :  { %3293 = vmatpush3.msk.msra.mxu0 %vm1858_vm1, %v1853_v29 }
0x17e7   :  { %3295 = vmatmul.mubr.msk.f32.vlgmr.msra.gmra.mxu0 %vm1854_vm4, %v1765_v19  ;;  %3297 = vmatprep.subr.mxu0 %v3795_v17 }
0x17e8   :  { %3299 = vmatprep.mubr.msk.f32.mxu0 %vm3796_vm2, %v3795_v17 }
0x18a7   :  { %v1928_v30 = vpop.f32.mrf.mxu0 }
0x18a8   :  { %v1929_v31 = vadd.f32 %v1928_v30, %v1853_v29 }
0x18a9   :  { %v3296_v33 = vpop.f32.mrf.mxu0 }
0x18aa   :  { %v1932_v34 = vmul.f32 %v3406_v26, %v1929_v31  ;;  %v3091_v26 = vld [vmem:[#allocation24] ss:$0 sm:$0xff]  ;;  %v2607_v33 = vld [vmem:[#allocation27] sm:$0x1] }
0x18ac   :  { %v1939_v35 = vadd.f32 %v3075_v32, %v1932_v34  ;;  %v2606_v34 = vld [vmem:[#allocation26] sm:$0x1] }
0x18ae   :  { %v1940_v36 = vmax.f32 %v1939_v35, 0.0 }
0x18b0   :  { %3298 = vmatpush3.xpose.msk.msra.mxu0 %vm468_vm3, %v1940_v36  ;;  %3303 = vmatpush3.xpose.msk.msra.mxu1 %vm468_vm3, %v1940_v36 }
0x18b1   :  { %3307 = vmatprep.subr.mxu0 %v3795_v17  ;;  %3312 = vmatprep.subr.mxu1 %v3795_v17 }
0x18b3   :  { %3300 = vmatmul.mubr.msk.f32.vlgmr.msra.gmra.mxu0 %vm468_vm3, %v1942_v37  ;;  %3305 = vmatmul.mubr.msk.f32.vlgmr.msra.gmra.mxu1 %vm468_vm3, %v1941_v38 }
0x18b4   :  { %3308 = vmatpush3.msk.msra.mxu0 %vm1858_vm1, %v1765_v19  ;;  %3313 = vmatpush3.msk.msra.mxu1 %vm1858_vm1, %v1940_v36 }
0x18b5   :  { %3309 = vmatprep.mubr.msk.f32.mxu0 %vm3796_vm2, %v3795_v17  ;;  %3317 = vmatprep.subr.mxu0 %v3795_v17 }
0x18b6   :  { %3314 = vmatprep.mubr.msk.f32.mxu1 %vm3796_vm2, %v3795_v17  ;;  %3322 = vmatprep.subr.mxu1 %v3795_v17 }
0x1973   :  { %v2016_v39 = vpop.f32.mrf.mxu0  ;;  %v2089_v41 = vpop.f32.mrf.mxu1 }
0x1974   :  { %3310 = vmatmul.mubr.msk.f32.vlgmr.msra.gmra.mxu0 %vm1854_vm4, %v2016_v39 }
0x1975   :  { %3318 = vmatpush3.msk.msra.mxu0 %vm1858_vm1, %v1765_v19  ;;  %v3301_v42 = vpop.f32.mrf.mxu0  ;;  %v3306_v43 = vpop.f32.mrf.mxu1  ;;  %3319 = vmatprep.mubr.msk.f32.mxu0 %vm3796_vm2, %v3795_v17  ;;  %vm2523_vm1 = vcmask 1041408  }
0x1976   :  { %3327 = vmatprep.subr.mxu0 %v3795_v17 }
0x1a34   :  { %v2164_v45 = vpop.f32.mrf.mxu0 }
0x1a35   :  { %v2165_v47 = vadd.f32 %v2164_v45, %v2089_v41  ;;  %v2833_v41 = vstv %s4385_s21  ;;  %s3797_s21 = smov [#allocation32]  }
0x1a36   :  { %v3311_v48 = vpop.f32.mrf.mxu0  ;;  %s3027_s4 = sshll.u32 %s3797_s21, 4  ;;  %s3028_s4 = int_to_ptr.vmem [resolvable:$true] %s3027_s4 }
0x1a37   :  { %v2169_v49 = vadd.f32 %v2168_v46, %v2165_v47  ;;  %s3737_s10 = scalar_lea.vmem %s3028_s4, 16  ;;  %s3741_s5 = scalar_lea.vmem %s3028_s4, 32 }
0x1a38   :  { %p3738_p10 = scmp.ne.s32.totalorder %s3028_s4, %s3737_s10  ;;  %p3742_p11 = scmp.lt.s32.totalorder %s3028_s4, %s3028_s4 }
0x1a39   :  { %3407 = vtanh.f32 %v2169_v49  ;;  %p3743_p12 = scmp.lt.s32.totalorder %s3741_s5, %s3737_s10 }
0x1a3b   :  { %p3744_p13 = por %p3743_p12, %p3742_p11 }
0x1a3d   :  { %p3745_p0 = pnand %p3744_p13, %p3738_p10 }
0x1a46   :  { %v3408_v50 = vpop.eup %3407 }
0x1a47   :  { %v2172_v51 = vsel %vm2171_vm8, %v3408_v50, -inf  ;;  %v2209_v2 = vrot.slane %v3408_v50, %v4088_v28 }
0x1a48   :  { %2173 = vmax.xlane.f32.xlu0 %v2172_v51 }
0x1ad1   :  { %v2174_v52 = vpop.xlane.xlu0 %2173 }
0x1ad2   :  { %vm2175_vm10 = vcmp.eq.f32.partialorder %v3408_v50, %v2174_v52 }
0x1ad3   :  { %v2176_v53 = vsel %vm2175_vm10, %v4044_v44, 4.0 }
0x1ad4   :  { %v2177_v54 = vsel %vm2171_vm8, %v2176_v53, inf }
0x1ad5   :  { %2178 = vmin.xlane.f32.xlu1 %v2177_v54 }
0x1b5e   :  { %v2179_v55 = vpop.xlane.xlu1 %2178 }
0x1b5f   :  { %vm2188_vm12 = vcmp.eq.f32.partialorder %v4044_v44, %v2179_v55  ;;  %v2183_v60 = vrot.slane %v2179_v55, %v4088_v28  ;;  %v2932_v55 = vld [vmem:[#allocation29 + $0x18] sm:$0xff] }
0x1b60   :  { %v2189_v56 = vsel %vm2188_vm12, -2.0, %v3408_v50  ;;  %vm4426_vm12 = vmmov %vm4424_vm14 }
0x1b61   :  { %v2190_v57 = vsel %vm2171_vm8, %v2189_v56, -inf  ;;  %vm2184_vm13 = vcmp.eq.f32.partialorder %v4044_v44, %v2183_v60  ;;  %v2933_v60 = vld [vmem:[#allocation30] sm:$0x1] }
0x1b62   :  { %2191 = vmax.xlane.f32.xlu0 %v2190_v57  ;;  %vm2185_vm15 = vmand %vm4424_vm14, %vm2184_vm13  ;;  %v2930_v57 = vld [vmem:[#allocation29 + $0x8] sm:$0xff]  ;;  %vm3007_vm13 = vcmask 253952  }
0x1b63   :  { %v2186_v63 = vsel %vm2185_vm15, 1.0, %v3795_v17 }
0x1beb   :  { %v2192_v40 = vpop.xlane.xlu0 %2191 }
0x1bec   :  { %vm2193_vm11 = vcmp.eq.f32.partialorder %v2189_v56, %v2192_v40  ;;  %v2931_v56 = vld [vmem:[#allocation29 + $0x10] sm:$0xff] }
0x1bed   :  { %v2194_v58 = vsel %vm2193_vm11, %v4044_v44, 4.0 }
0x1bee   :  { %v2195_v59 = vsel %vm2171_vm8, %v2194_v58, inf  ;;  %vm2836_vm8 = vcmask 8192  }
0x1bef   :  { %2196 = vmin.xlane.f32.xlu1 %v2195_v59 }
0x1c78   :  { %v2197_v61 = vpop.xlane.xlu1 %2196 }
0x1c79   :  { %v2201_v62 = vrot.slane %v2197_v61, %v4088_v28  ;;  %v2437_v28 = vld [vmem:[%s4381_s17 + $0x18] sm:$0xff] }
0x1c7b   :  { %vm2202_vm0 = vcmp.eq.f32.partialorder %v4044_v44, %v2201_v62 }
0x1c7c   :  { %vm2203_vm7 = vmand %vm4425_vm6, %vm2202_vm0 }
0x1c7d   :  { %v2204_v0 = vsel %vm2203_vm7, 1.0, %v3795_v17 }
0x1c7e   :  { %v2205_v1 = vadd.f32 %v2204_v0, %v2186_v63 }
0x1c80   :  { %3315 = vmatmul.mubr.msk.f32.vlgmr.msra.gmra.mxu1 %vm1854_vm4, %v2205_v1  ;;  %3320 = vmatmul.mubr.msk.f32.vlgmr.msra.gmra.mxu0 %vm1854_vm4, %v2205_v1  ;;  %v2210_v3 = vmul.f32 %v2209_v2, %v2205_v1 }
0x1c81   :  { %3323 = vmatpush3.xpose.msk.msra.mxu1 %vm1854_vm4, %v2205_v1  ;;  %3324 = vmatprep.mubr.msk.f32.mxu1 %vm3796_vm2, %v3795_v17 }
0x1c82   :  { %v2212_v4 = vsel %vm2211_vm5, %v2210_v3, 0.0  ;;  %3335 = vmatprep.mubr.msk.f32.mxu0 %vm3796_vm2, %v3795_v17  ;;  %3338 = vmatprep.subr.mxu1 %v3795_v17 }
0x1c83   :  { %2213 = vadd.xlane.f32.xlu0 %v2212_v4  ;;  %3328 = vmatpush3.msra.mxu0 %v2437_v28 }
0x1c84   :  { %3329 = vmatprep.subr.mxu0 %v3795_v17 }
0x1c85   :  { %3330 = vmatpush3.msra.mxu0 %v2436_v5 }
0x1c86   :  { %3331 = vmatprep.subr.mxu0 %v3795_v17 }
0x1c87   :  { %3332 = vmatpush3.msra.mxu0 %v2435_v6 }
0x1c88   :  { %3333 = vmatprep.subr.mxu0 %v3795_v17 }
0x1c89   :  { %3334 = vmatpush3.msra.mxu0 %v2434_v7 }
0x1c8a   :  { %3348 = vmatprep.subr.mxu0 %v3795_v17 }
0x1d0c   :  { %v2214_v8 = vpop.xlane.xlu0 %2213 }
0x1d40   :  { %v2286_v9 = vpop.f32.mrf.mxu1  ;;  %v2357_v10 = vpop.f32.mrf.mxu0 }
0x1d41   :  { %v2290_v11 = vmul.f32 %v2286_v9, %v2214_v8  ;;  %3325 = vmatmul.mubr.msk.f32.vlgmr.msra.gmra.mxu1 %vm1854_vm4, %v2357_v10  ;;  %vm2519_vm4 = vcmask 15360  }
0x1d42   :  { %v3316_v12 = vpop.f32.mrf.mxu1  ;;  %v3321_v13 = vpop.f32.mrf.mxu0  ;;  %3340 = vmatprep.mubr.msk.f32.mxu1 %vm3796_vm2, %v3795_v17 }
0x1d43   :  { %3336 = vmatmul.mubr.msk.f32.vlgmr.msra.gmra.mxu0 %vm468_vm3, %v2290_v11 }
0x1d44   :  { %3350 = vmatprep.mubr.msk.f32.mxu0 %vm3796_vm2, %v3795_v17 }
0x1e01   :  { %v2430_v14 = vpop.f32.mrf.mxu1 }
0x1e02   :  { %v2440_v15 = vsel %vm2439_vm9, %v2430_v14, 0.0 }
0x1e03   :  { %2441 = vadd.xlane.f32.xlu1 %v2440_v15  ;;  %v3326_v16 = vpop.f32.mrf.mxu1  ;;  %v2514_v18 = vpop.f32.mrf.mxu0 }
0x1e05   :  { %v3337_v19 = vpop.f32.mrf.mxu0 }
0x1e8c   :  { %v2442_v20 = vpop.xlane.xlu1 %2441 }
0x1e8d   :  { %v2443_v21 = vadd.f32 1.0, %v2442_v20 }
0x1e8f   :  { %3409 = vrsqrt.f32 %v2443_v21 }
0x1e9c   :  { %v3410_v22 = vpop.eup %3409 }
0x1e9d   :  { %v2518_v23 = vmul.f32 %v3410_v22, %v2514_v18 }
0x1e9f   :  { %3339 = vmatpush3.msk.msra.mxu1 %vm2523_vm1, %v2518_v23 }
0x1ea0   :  { %3341 = vmatmul.mubr.msk.f32.vlgmr.msra.gmra.mxu1 %vm2519_vm4, %v2430_v14  ;;  %3343 = vmatprep.subr.mxu1 %v3795_v17 }
0x1ea1   :  { %3345 = vmatprep.mubr.msk.f32.mxu1 %vm3796_vm2, %v3795_v17 }
0x1f60   :  { %v2593_v24 = vpop.f32.mrf.mxu1 }
0x1f61   :  { %v2594_v25 = vadd.f32 %v2593_v24, %v2518_v23 }
0x1f62   :  { %v3342_v29 = vpop.f32.mrf.mxu1 }
0x1f63   :  { %v2597_v30 = vmul.f32 %v3410_v22, %v2594_v25 }
0x1f65   :  { %v2604_v31 = vadd.f32 %v3091_v26, %v2597_v30 }
0x1f67   :  { %v2605_v32 = vmax.f32 %v2604_v31, 0.0 }
0x1f69   :  { %3344 = vmatpush3.xpose.msk.msra.mxu1 %vm468_vm3, %v2605_v32  ;;  %3349 = vmatpush3.xpose.msk.msra.mxu0 %vm468_vm3, %v2605_v32 }
0x1f6a   :  { %3353 = vmatprep.subr.mxu1 %v3795_v17  ;;  %3358 = vmatprep.subr.mxu0 %v3795_v17 }
0x1f6c   :  { %3346 = vmatmul.mubr.msk.f32.vlgmr.msra.gmra.mxu1 %vm468_vm3, %v2607_v33  ;;  %3351 = vmatmul.mubr.msk.f32.vlgmr.msra.gmra.mxu0 %vm468_vm3, %v2606_v34 }
0x1f6d   :  { %3354 = vmatpush3.msk.msra.mxu1 %vm2523_vm1, %v2430_v14  ;;  %3359 = vmatpush3.msk.msra.mxu0 %vm2523_vm1, %v2605_v32 }
0x1f6e   :  { %3355 = vmatprep.mubr.msk.f32.mxu1 %vm3796_vm2, %v3795_v17  ;;  %3360 = vmatprep.mubr.msk.f32.mxu0 %vm3796_vm2, %v3795_v17 }
0x1f6f   :  { %3363 = vmatprep.subr.mxu1 %v3795_v17 }
0x202c   :  { %v2681_v35 = vpop.f32.mrf.mxu1  ;;  %v2754_v36 = vpop.f32.mrf.mxu0 }
0x202d   :  { %3356 = vmatmul.mubr.msk.f32.vlgmr.msra.gmra.mxu1 %vm2519_vm4, %v2681_v35 }
0x202e   :  { %v3347_v37 = vpop.f32.mrf.mxu1  ;;  %v3352_v38 = vpop.f32.mrf.mxu0  ;;  %3371 = vmatprep.mubr.msk.f32.mxu1 %vm3796_vm2, %v3795_v17  ;;  %3364 = vmatpush3.msra.mxu1 %v2932_v55 }
0x202f   :  { %3365 = vmatprep.subr.mxu1 %v3795_v17 }
0x2030   :  { %3366 = vmatpush3.msra.mxu1 %v2931_v56 }
0x2031   :  { %3367 = vmatprep.subr.mxu1 %v3795_v17 }
0x2032   :  { %3368 = vmatpush3.msra.mxu1 %v2930_v57 }
0x2033   :  { %3369 = vmatprep.subr.mxu1 %v3795_v17 }
0x20ed   :  { %v2829_v39 = vpop.f32.mrf.mxu1 }
0x20ee   :  { %v2830_v42 = vadd.f32 %v2829_v39, %v2754_v36 }
0x20ef   :  { %v3357_v43 = vpop.f32.mrf.mxu1 }
0x20f0   :  { %v2834_v45 = vadd.f32 %v2833_v41, %v2830_v42 }
0x20f2   :  { %3411 = vtanh.f32 %v2834_v45 }
0x20ff   :  { %v3412_v46 = vpop.eup %3411 }
0x2100   :  { %v2837_v47 = vsel %vm2836_vm8, %v3412_v46, -inf }
0x2101   :  { %2838 = vmax.xlane.f32.xlu0 %v2837_v47 }
0x218a   :  { %v2839_v48 = vpop.xlane.xlu0 %2838 }
0x218b   :  { %vm2840_vm10 = vcmp.eq.f32.partialorder %v3412_v46, %v2839_v48 }
0x218c   :  { %v2841_v49 = vsel %vm2840_vm10, %v4044_v44, 2.0 }
0x218d   :  { %v2842_v50 = vsel %vm2836_vm8, %v2841_v49, inf }
0x218e   :  { %2843 = vmin.xlane.f32.xlu1 %v2842_v50 }
0x2217   :  { %v2844_v51 = vpop.xlane.xlu1 %2843 }
0x2218   :  { %vm2845_vm2 = vcmp.eq.f32.partialorder %v4044_v44, %v2844_v51  ;;  %v2929_v44 = vld [vmem:[#allocation29] sm:$0xff] }
0x2219   :  { %vm2846_vm11 = vmand %vm4426_vm12, %vm2845_vm2  ;;  %3370 = vmatpush3.msra.mxu1 %v2929_v44 }
0x221a   :  { %v2847_v52 = vsel %vm2846_vm11, 1.0, %v3795_v17 }
0x221b   :  { %3361 = vmatmul.mubr.msk.f32.vlgmr.msra.gmra.mxu0 %vm2519_vm4, %v2847_v52  ;;  %v2849_v53 = vmul.f32 %v3412_v46, %v2847_v52 }
0x221d   :  { %v2850_v54 = vsel %vm2836_vm8, %v2849_v53, 0.0 }
0x221e   :  { %2851 = vadd.xlane.f32.xlu0 %v2850_v54 }
0x22a7   :  { %v2852_v27 = vpop.xlane.xlu0 %2851 }
0x22db   :  { %v2924_v40 = vpop.f32.mrf.mxu0 }
0x22dc   :  { %v2928_v58 = vmul.f32 %v2924_v40, %v2852_v27 }
0x22dd   :  { %v3362_v59 = vpop.f32.mrf.mxu0 }
0x22de   :  { %3372 = vmatmul.mubr.msk.f32.vlgmr.msra.gmra.mxu1 %vm468_vm3, %v2928_v58 }
0x239e   :  { %v3003_v61 = vpop.f32.mrf.mxu1 }
0x239f   :  { %v3004_v62 = vadd.f32 %v3003_v61, %v2933_v60 }
0x23a0   :  { %v3373_v63 = vpop.f32.mrf.mxu1 }
0x23a1   :  { %v3008_v0 = vsel %vm3007_vm13, %v3004_v62, -inf }
0x23a2   :  { %3009 = vmax.xlane.f32.xlu1 %v3008_v0 }
0x242b   :  { %v3010_v1 = vpop.xlane.xlu1 %3009 }
0x242c   :  { %v3011_v2 = vsub.f32 %v3004_v62, %v3010_v1 }
0x242e   :  { %v3012_v3 = vmul.f32 1.442695, %v3011_v2 }
0x2430   :  { %3413 = vpow2.f32 %v3012_v3 }
0x243d   :  { %v3414_v17 = vpop.eup %3413 }
0x243e   :  { %v3014_v4 = vsel %vm3007_vm13, %v3414_v17, 0.0 }
0x243f   :  { %3015 = vadd.xlane.f32.xlu0 %v3014_v4 }
0x24c8   :  { %v3016_v28 = vpop.xlane.xlu0 %3015 }
0x24c9   :  { %3415 = vlog2.f32 %v3016_v28 }
0x24d6   :  { %v3416_v5 = vpop.eup %3415 }
0x24d7   :  { %v3018_v6 = vmul.f32 0.6931472, %v3416_v5 }
0x24d9   :  { %v3019_v7 = vsub.f32 %v3011_v2, %v3018_v6 }
0x24db   :  { %3020 = vst.msk [vmem:[#allocation32] sm:$0x1] %vm3007_vm13, %v3019_v7 }
0x24dc   :  { %3748 = shalt.err (!%p3745_p0)
}
0x24dd   :  { %3030 = dma.vmem_to_hbm [thread:$0]  %s3028_s4, 16, %s4388_s24, [#allocation8]  }
0x24de   :  { %3775 = dma.done.wait [#allocation8], 16  }
0x24df   :  { %3776 = vsyncadd [#allocation8], 4294967280 }
0x24e0   :  { %3034 = vsyncpa [#allocation7], 1 }
0x24e1   :  { %3035 = vsyncpa [#allocation10], 1 }
0x24e2   :  { %3036 = vsyncpa [#allocation13], 1 }
0x24e3   :  { %3037 = vsyncpa [#allocation16], 1 }
0x24e4   :  { %3038 = vsyncpa [#allocation19], 1 }
0x24e5   :  { %3039 = vsyncpa [#allocation22], 1 }
0x24e6   :  { %3040 = vsyncpa [#allocation25], 1 }
0x24e7   :  { %3041 = vsyncpa [#allocation28], 1 }
0x24e8   :  { %3042 = vsyncpa [#allocation31], 1 }
0x24e9   :  { %3043 = vsyncpa [#allocation8], 1 }

</bundles_post_ra>
